<compile_context>
chip_gen: v7x
topology: tpu7x:2x2x1
jax: 0.10.0
libtpu: 0.0.40
codegen_flags: <defaults>
</compile_context>

<pallas_src>
import numpy as np
import jax
import jax.numpy as jnp
from jax import lax
from jax.experimental import pallas as pl
from jax.experimental.pallas import tpu as pltpu

EPSILON = 1e-4


# --------------------------------------------------------------------------- #
# Filter construction (matches the PyTorch module's gaussian_kernel / DoGFB)  #
# --------------------------------------------------------------------------- #
def gaussian_kernel(sigma, size, norm=True):
    ax = np.arange(size, dtype=np.float64) - (size - 1) / 2.0
    xx, yy = np.meshgrid(ax, ax)
    k = np.exp(-(xx ** 2 + yy ** 2) / (2.0 * float(sigma) ** 2))
    if norm:
        k = k / k.sum()
    return k


def gaussian_taps_1d(sigma, size):
    ax = np.arange(size, dtype=np.float64) - (size - 1) / 2.0
    return np.exp(-(ax ** 2) / (2.0 * float(sigma) ** 2))


def _round_up(x, m):
    return (x + m - 1) // m * m


def build_retina_filters(C, P, k_la, k_p, k_m, radius_la,
                         rc_p, rs_p, opp_p, rc_m, rs_m):
    """Dense filters (for the conv reference) + separable decomposition
    (baked into the Pallas kernel)."""
    # LightAdaptation: normalized Gaussian == outer(g1n, g1n)
    gk = gaussian_kernel(radius_la / np.sqrt(2.0), k_la, norm=True)
    g1 = gaussian_taps_1d(radius_la / np.sqrt(2.0), k_la)
    g1n = g1 / g1.sum()

    # P-cell DoG bank (DoGFB.initialize, across_channels=True)
    assert len(set(rc_p)) == 1 and len(set(rs_p)) == 1, \
        "separable P-cell path assumes shared center/surround radii"
    c2d = gaussian_kernel(rc_p[0] / np.sqrt(2.0), k_p, norm=False)
    s2d = gaussian_kernel(rs_p[0] / np.sqrt(2.0), k_p, norm=False)
    c1 = gaussian_taps_1d(rc_p[0] / np.sqrt(2.0), k_p)
    s1 = gaussian_taps_1d(rs_p[0] / np.sqrt(2.0), k_p)
    wp = np.zeros((P, C, k_p, k_p), np.float64)
    mix_c = np.zeros((P, C), np.float64)
    mix_s = np.zeros((P, C), np.float64)
    for i in range(P):
        ker = np.stack([cw * c2d + sw * s2d
                        for cw, sw in zip(opp_p[i][0], opp_p[i][1])], axis=0)
        norm = abs(ker.sum())
        wp[i] = ker / norm
        mix_c[i] = np.asarray(opp_p[i][0], np.float64) / norm
        mix_s[i] = np.asarray(opp_p[i][1], np.float64) / norm

    # M-cell DoG filter (DoGFB.initialize, across_channels=False)
    cm2d = gaussian_kernel(rc_m / np.sqrt(2.0), k_m, norm=False)
    sm2d = gaussian_kernel(rs_m / np.sqrt(2.0), k_m, norm=False)
    wm_raw = cm2d - sm2d
    m_norm = abs(wm_raw.sum())
    wm = (wm_raw / m_norm)[None, None]
    cm1 = gaussian_taps_1d(rc_m / np.sqrt(2.0), k_m)
    sm1 = gaussian_taps_1d(rs_m / np.sqrt(2.0), k_m)

    dense = dict(gk=gk, wp=wp, wm=wm)
    sep = dict(gk1d=g1n, c1_p=c1, s1_p=s1, mix_c=mix_c, mix_s=mix_s,
               c1_m=cm1, s1_m=sm1, m_scale=1.0 / m_norm)
    return dense, sep


# --------------------------------------------------------------------------- #
# Fused Pallas kernel                                                         #
# --------------------------------------------------------------------------- #
def make_retina_forward(*, gk1d, c1_p, s1_p, mix_c, mix_s, c1_m, s1_m, m_scale,
                        in_shape, h_tile=None, eps=EPSILON, interpret=False):
    """Returns a jitted RetinaBlock forward: (N,C,H,W) -> (N,P+1,H,W)."""
    # ---- bake all filter taps as Python float constants (no SMEM operands)
    gk_t = [float(v) for v in np.asarray(gk1d, np.float64)]
    cp_t = [float(v) for v in np.asarray(c1_p, np.float64)]
    sp_t = [float(v) for v in np.asarray(s1_p, np.float64)]
    cm_t = [float(v) for v in np.asarray(c1_m, np.float64)]
    sm_t = [float(v) for v in np.asarray(s1_m, np.float64)]
    A = [[float(v) for v in row] for row in np.asarray(mix_c, np.float64)]
    B = [[float(v) for v in row] for row in np.asarray(mix_s, np.float64)]
    m_scale_f = float(m_scale)

    N, C, H, W = in_shape
    P = len(A)
    assert len(A[0]) == C
    kla, kp, km = len(gk_t), len(cp_t), len(cm_t)
    pla, pp, pm = kla // 2, kp // 2, km // 2
    pq = max(pp, pm)            # halo x_la must carry for the DoG convs
    pt = pla + pq               # halo the raw input must carry
    assert H > pt and W > pt, "image too small for reflect padding"

    # H tiling: second "parallel" grid axis (feeds both v7x TCs at batch 1).
    if h_tile is None:
        h_tile = H // 2 if H % 16 == 0 else H
    if not (H % h_tile == 0 and (h_tile % 8 == 0 or h_tile == H)):
        h_tile = H
    n_h = H // h_tile

    Wl = max(128, _round_up(W, 128))   # lane-dense compute width
    Hp, Wp = H + 2 * pt, Wl + 2 * pt   # padded input block dims
    slab_h = h_tile + 2 * pt           # rows consumed per output tile
    eh, ew = h_tile + 2 * pq, Wl + 2 * pq   # extended x_la domain per tile
    dpp, dpm = pq - pp, pq - pm

    def _sep_conv(img, taps):
        """VALID 2-D conv with the separable kernel outer(taps, taps).
        Taps are Python floats -> pure VPU mul-adds, no scalar loads; each
        accumulation chain is only len(taps) long (register resident)."""
        k = len(taps)
        r, c = img.shape
        oc = c - (k - 1)
        h = taps[0] * img[:, 0:oc]
        for d in range(1, k):
            h = h + taps[d] * img[:, d:d + oc]
        orr = r - (k - 1)
        v = taps[0] * h[0:orr, :]
        for d in range(1, k):
            v = v + taps[d] * h[d:d + orr, :]
        return v

    def kernel(x_ref, o_ref):
        # x_ref : (C, Hp, Wp) reflect-padded input image (whole image block)
        # o_ref : (P + 1, h_tile, Wl) fused P-cell + M-cell output tile
        row0 = pl.multiple_of(pl.program_id(1) * h_tile, 8)
        xs = [x_ref[c, pl.ds(row0, slab_h), :] for c in range(C)]

        # ---- light adaptation: separable Gaussian blur of the channel mean
        m = xs[0]
        for c in range(1, C):
            m = m + xs[c]
        m = m * (1.0 / C)
        blur = _sep_conv(m, gk_t)                          # (eh, ew)
        inv = pl.reciprocal(blur + eps, approx=False)
        xla = [xs[c][pla:pla + eh, pla:pla + ew] * inv - 1.0 for c in range(C)]

        # ---- P cells: shared center/surround blurs, linearly mixed per output
        cb = [_sep_conv(xla[c], cp_t) for c in range(C)]
        sb = [_sep_conv(xla[c], sp_t) for c in range(C)]
        for i in range(P):
            y = A[i][0] * cb[0] + B[i][0] * sb[0]
            for c in range(1, C):
                y = y + A[i][c] * cb[c] + B[i][c] * sb[c]
            if dpp:
                y = y[dpp:dpp + h_tile, dpp:dpp + Wl]
            o_ref[i] = y

        # ---- M cell: DoG of the channel mean of x_la -> output channel P
        xm = xla[0]
        for c in range(1, C):
            xm = xm + xla[c]
        xm = xm * (1.0 / C)
        ym = (_sep_conv(xm, cm_t) - _sep_conv(xm, sm_t)) * m_scale_f
        if dpm:
            ym = ym[dpm:dpm + h_tile, dpm:dpm + Wl]
        o_ref[P] = ym

    grid_spec = pl.GridSpec(
        grid=(N, n_h),
        in_specs=[
            # Whole padded image per batch element; block index is constant in
            # the h axis, so Pallas does not re-DMA it across H tiles.
            pl.BlockSpec((None, C, Hp, Wp), lambda n, h: (n, 0, 0, 0)),
        ],
        out_specs=pl.BlockSpec((None, P + 1, h_tile, Wl),
                               lambda n, h: (n, 0, h, 0)),
    )

    flops_px = (4 * kla + C + 2 + 2 * C            # LA blur + mean + recip + la
                + 2 * C * 4 * kp + 4 * P * C       # center/surround blurs + mix
                + C + 8 * km + 2)                  # M mean + DoG blurs + scale
    cost = pl.CostEstimate(
        flops=int(N * H * Wl * flops_px),
        transcendentals=0,
        bytes_accessed=int(4 * (N * C * Hp * Wp + N * (P + 1) * H * Wl)),
    )

    retina_call = pl.pallas_call(
        kernel,
        out_shape=jax.ShapeDtypeStruct((N, P + 1, H, Wl), jnp.float32),
        grid_spec=grid_spec,
        compiler_params=pltpu.CompilerParams(
            dimension_semantics=("parallel", "parallel"),
            vmem_limit_bytes=32 * 1024 * 1024,     # explicit budget (v7x safe)
        ),
        cost_estimate=cost,
        interpret=interpret,
    )

    @jax.jit
    def forward(x):
        x = x.astype(jnp.float32)
        # One reflect pad of the raw input (exact 'reflect' halo for both the
        # LA blur and the DoG convs), then extend the last dim with edge
        # values to the lane-dense width (those columns are cropped below).
        xpad = jnp.pad(x, ((0, 0), (0, 0), (pt, pt), (pt, pt)), mode="reflect")
        if Wl > W:
            xpad = jnp.pad(xpad, ((0, 0), (0, 0), (0, 0), (0, Wl - W)),
                           mode="edge")
        y = retina_call(xpad)
        return y[..., :W]

    return forward


# --------------------------------------------------------------------------- #
# Pure-JAX reference (mirrors the PyTorch module with reflect padding)        #
# --------------------------------------------------------------------------- #
def retina_block_reference(x, gk, wp, wm, *, eps=EPSILON):
    f32 = jnp.float32
    x = x.astype(f32)
    pla, pp, pm = gk.shape[-1] // 2, wp.shape[-1] // 2, wm.shape[-1] // 2
    dn = ("NCHW", "OIHW", "NCHW")
    gk = jnp.asarray(gk, f32)
    wp = jnp.asarray(wp, f32)
    wm = jnp.asarray(wm, f32)

    mean_c = jnp.mean(x, axis=1, keepdims=True)
    mpad = jnp.pad(mean_c, ((0, 0), (0, 0), (pla, pla), (pla, pla)),
                   mode="reflect")
    blur = lax.conv_general_dilated(mpad, gk[None, None], (1, 1), "VALID",
                                    dimension_numbers=dn)
    x_la = x / (blur + eps) - 1.0

    xpp = jnp.pad(x_la, ((0, 0), (0, 0), (pp, pp), (pp, pp)), mode="reflect")
    y_p = lax.conv_general_dilated(xpp, wp, (1, 1), "VALID",
                                   dimension_numbers=dn)
    xm = jnp.mean(x_la, axis=1, keepdims=True)
    xmp = jnp.pad(xm, ((0, 0), (0, 0), (pm, pm), (pm, pm)), mode="reflect")
    y_m = lax.conv_general_dilated(xmp, wm, (1, 1), "VALID",
                                   dimension_numbers=dn)
    return jnp.concatenate([y_p, y_m], axis=1)


if __name__ == "__main__":
    # Small but representative RetinaBlock config:
    #   3 input channels, 3 parvo (P) channels, 1 magno (M) channel.
    N, C, H, W = 2, 3, 16, 16
    P_CH, M_CH = 3, 1
    K_LA = K_P = K_M = 5
    RADIUS_LA = 2.0
    rc_p = [0.5, 0.5, 0.5]
    rs_p = [1.5, 1.5, 1.5]
    opp_p = np.array([
        [[1.0, 0.0, 0.0], [0.0, -1.0, 0.0]],      # R-center / G-surround
        [[0.0, 1.0, 0.0], [-1.0, 0.0, 0.0]],      # G-center / R-surround
        [[0.0, 0.0, 1.0], [-0.5, -0.5, 0.0]],     # B-center / Y-surround
    ])
    rc_m, rs_m = 0.6, 1.8

    dense, sep = build_retina_filters(C, P_CH, K_LA, K_P, K_M, RADIUS_LA,
                                      rc_p, rs_p, opp_p, rc_m, rs_m)

    key = jax.random.PRNGKey(0)
    x = jax.random.uniform(key, (N, C, H, W), dtype=jnp.float32)

    forward = make_retina_forward(in_shape=(N, C, H, W), h_tile=8, **sep)
    y = forward(x)
    jax.block_until_ready(y)
    assert y.shape == (N, P_CH + M_CH, H, W), y.shape

    y_ref = retina_block_reference(x, dense["gk"], dense["wp"], dense["wm"])
    err = float(jnp.max(jnp.abs(y - y_ref)))
    assert jnp.allclose(y, y_ref, atol=1e-4, rtol=1e-4), err

    print("KERNEL_OK")
</pallas_src>

<mosaic_0001>
module attributes {stable_mosaic.version = 11 : i64} {
  func.func @kernel(%arg0: i32, %arg1: i32, %arg2: memref<1x3x24x136xf32, #tpu.memory_space<vmem>>, %arg3: memref<1x4x8x128xf32, #tpu.memory_space<vmem>>) attributes {dimension_semantics = [#tpu.dimension_semantics<parallel>, #tpu.dimension_semantics<parallel>], iteration_bounds = array<i64: 2, 2>, scalar_prefetch = 0 : i64, scratch_operands = 0 : i64, tpu.core_type = #tpu.core_type<tc>, window_params = [{transform_indices = @transform_0, window_bounds = array<i64: 1, 3, 24, 136>}, {transform_indices = @transform_1, window_bounds = array<i64: 1, 4, 8, 128>}]} {
    %c8_i32 = arith.constant 8 : i32
    %0 = arith.muli %arg1, %c8_i32 : i32
    %1 = tpu.assume_multiple %0, 8 : i32
    %c0 = arith.constant 0 : index
    %c0_0 = arith.constant 0 : index
    %2 = arith.index_cast %1 : i32 to index
    %c0_1 = arith.constant 0 : index
    %3 = vector.load %arg2[%c0, %c0_0, %2, %c0_1] : memref<1x3x24x136xf32, #tpu.memory_space<vmem>>, vector<1x1x16x136xf32>
    %4 = vector.shape_cast %3 : vector<1x1x16x136xf32> to vector<16x136xf32>
    %c0_2 = arith.constant 0 : index
    %c1 = arith.constant 1 : index
    %5 = arith.index_cast %1 : i32 to index
    %c0_3 = arith.constant 0 : index
    %6 = vector.load %arg2[%c0_2, %c1, %5, %c0_3] : memref<1x3x24x136xf32, #tpu.memory_space<vmem>>, vector<1x1x16x136xf32>
    %7 = vector.shape_cast %6 : vector<1x1x16x136xf32> to vector<16x136xf32>
    %c0_4 = arith.constant 0 : index
    %c2 = arith.constant 2 : index
    %8 = arith.index_cast %1 : i32 to index
    %c0_5 = arith.constant 0 : index
    %9 = vector.load %arg2[%c0_4, %c2, %8, %c0_5] : memref<1x3x24x136xf32, #tpu.memory_space<vmem>>, vector<1x1x16x136xf32>
    %10 = vector.shape_cast %9 : vector<1x1x16x136xf32> to vector<16x136xf32>
    %11 = arith.addf %4, %7 : vector<16x136xf32>
    %12 = arith.addf %11, %10 : vector<16x136xf32>
    %cst = arith.constant 0.333333343 : f32
    %13 = vector.broadcast %cst : f32 to vector<16x136xf32>
    %14 = arith.mulf %12, %13 : vector<16x136xf32>
    %15 = vector.extract_strided_slice %14 {offsets = [0, 0], sizes = [16, 132], strides = [1, 1]} : vector<16x136xf32> to vector<16x132xf32>
    %cst_6 = arith.constant 0.111703366 : f32
    %16 = vector.broadcast %cst_6 : f32 to vector<16x132xf32>
    %17 = arith.mulf %16, %15 : vector<16x132xf32>
    %18 = vector.extract_strided_slice %14 {offsets = [0, 1], sizes = [16, 132], strides = [1, 1]} : vector<16x136xf32> to vector<16x132xf32>
    %cst_7 = arith.constant 0.236476019 : f32
    %19 = vector.broadcast %cst_7 : f32 to vector<16x132xf32>
    %20 = arith.mulf %19, %18 : vector<16x132xf32>
    %21 = arith.addf %17, %20 : vector<16x132xf32>
    %22 = vector.extract_strided_slice %14 {offsets = [0, 2], sizes = [16, 132], strides = [1, 1]} : vector<16x136xf32> to vector<16x132xf32>
    %cst_8 = arith.constant 0.30364123 : f32
    %23 = vector.broadcast %cst_8 : f32 to vector<16x132xf32>
    %24 = arith.mulf %23, %22 : vector<16x132xf32>
    %25 = arith.addf %21, %24 : vector<16x132xf32>
    %26 = vector.extract_strided_slice %14 {offsets = [0, 3], sizes = [16, 132], strides = [1, 1]} : vector<16x136xf32> to vector<16x132xf32>
    %cst_9 = arith.constant 0.236476019 : f32
    %27 = vector.broadcast %cst_9 : f32 to vector<16x132xf32>
    %28 = arith.mulf %27, %26 : vector<16x132xf32>
    %29 = arith.addf %25, %28 : vector<16x132xf32>
    %30 = vector.extract_strided_slice %14 {offsets = [0, 4], sizes = [16, 132], strides = [1, 1]} : vector<16x136xf32> to vector<16x132xf32>
    %cst_10 = arith.constant 0.111703366 : f32
    %31 = vector.broadcast %cst_10 : f32 to vector<16x132xf32>
    %32 = arith.mulf %31, %30 : vector<16x132xf32>
    %33 = arith.addf %29, %32 : vector<16x132xf32>
    %34 = vector.extract_strided_slice %33 {offsets = [0, 0], sizes = [12, 132], strides = [1, 1]} : vector<16x132xf32> to vector<12x132xf32>
    %cst_11 = arith.constant 0.111703366 : f32
    %35 = vector.broadcast %cst_11 : f32 to vector<12x132xf32>
    %36 = arith.mulf %35, %34 : vector<12x132xf32>
    %37 = vector.extract_strided_slice %33 {offsets = [1, 0], sizes = [12, 132], strides = [1, 1]} : vector<16x132xf32> to vector<12x132xf32>
    %cst_12 = arith.constant 0.236476019 : f32
    %38 = vector.broadcast %cst_12 : f32 to vector<12x132xf32>
    %39 = arith.mulf %38, %37 : vector<12x132xf32>
    %40 = arith.addf %36, %39 : vector<12x132xf32>
    %41 = vector.extract_strided_slice %33 {offsets = [2, 0], sizes = [12, 132], strides = [1, 1]} : vector<16x132xf32> to vector<12x132xf32>
    %cst_13 = arith.constant 0.30364123 : f32
    %42 = vector.broadcast %cst_13 : f32 to vector<12x132xf32>
    %43 = arith.mulf %42, %41 : vector<12x132xf32>
    %44 = arith.addf %40, %43 : vector<12x132xf32>
    %45 = vector.extract_strided_slice %33 {offsets = [3, 0], sizes = [12, 132], strides = [1, 1]} : vector<16x132xf32> to vector<12x132xf32>
    %cst_14 = arith.constant 0.236476019 : f32
    %46 = vector.broadcast %cst_14 : f32 to vector<12x132xf32>
    %47 = arith.mulf %46, %45 : vector<12x132xf32>
    %48 = arith.addf %44, %47 : vector<12x132xf32>
    %49 = vector.extract_strided_slice %33 {offsets = [4, 0], sizes = [12, 132], strides = [1, 1]} : vector<16x132xf32> to vector<12x132xf32>
    %cst_15 = arith.constant 0.111703366 : f32
    %50 = vector.broadcast %cst_15 : f32 to vector<12x132xf32>
    %51 = arith.mulf %50, %49 : vector<12x132xf32>
    %52 = arith.addf %48, %51 : vector<12x132xf32>
    %cst_16 = arith.constant 9.99999974E-5 : f32
    %53 = vector.broadcast %cst_16 : f32 to vector<12x132xf32>
    %54 = arith.addf %52, %53 : vector<12x132xf32>
    %55 = tpu.reciprocal %54 : vector<12x132xf32> -> vector<12x132xf32>
    %56 = vector.extract_strided_slice %4 {offsets = [2, 2], sizes = [12, 132], strides = [1, 1]} : vector<16x136xf32> to vector<12x132xf32>
    %57 = arith.mulf %56, %55 : vector<12x132xf32>
    %cst_17 = arith.constant 1.000000e+00 : f32
    %58 = vector.broadcast %cst_17 : f32 to vector<12x132xf32>
    %59 = arith.subf %57, %58 : vector<12x132xf32>
    %60 = vector.extract_strided_slice %7 {offsets = [2, 2], sizes = [12, 132], strides = [1, 1]} : vector<16x136xf32> to vector<12x132xf32>
    %61 = arith.mulf %60, %55 : vector<12x132xf32>
    %cst_18 = arith.constant 1.000000e+00 : f32
    %62 = vector.broadcast %cst_18 : f32 to vector<12x132xf32>
    %63 = arith.subf %61, %62 : vector<12x132xf32>
    %64 = vector.extract_strided_slice %10 {offsets = [2, 2], sizes = [12, 132], strides = [1, 1]} : vector<16x136xf32> to vector<12x132xf32>
    %65 = arith.mulf %64, %55 : vector<12x132xf32>
    %cst_19 = arith.constant 1.000000e+00 : f32
    %66 = vector.broadcast %cst_19 : f32 to vector<12x132xf32>
    %67 = arith.subf %65, %66 : vector<12x132xf32>
    %68 = vector.extract_strided_slice %59 {offsets = [0, 0], sizes = [12, 128], strides = [1, 1]} : vector<12x132xf32> to vector<12x128xf32>
    %cst_20 = arith.constant 1.12535176E-7 : f32
    %69 = vector.broadcast %cst_20 : f32 to vector<12x128xf32>
    %70 = arith.mulf %69, %68 : vector<12x128xf32>
    %71 = vector.extract_strided_slice %59 {offsets = [0, 1], sizes = [12, 128], strides = [1, 1]} : vector<12x132xf32> to vector<12x128xf32>
    %cst_21 = arith.constant 0.0183156393 : f32
    %72 = vector.broadcast %cst_21 : f32 to vector<12x128xf32>
    %73 = arith.mulf %72, %71 : vector<12x128xf32>
    %74 = arith.addf %70, %73 : vector<12x128xf32>
    %75 = vector.extract_strided_slice %59 {offsets = [0, 2], sizes = [12, 128], strides = [1, 1]} : vector<12x132xf32> to vector<12x128xf32>
    %cst_22 = arith.constant 1.000000e+00 : f32
    %76 = vector.broadcast %cst_22 : f32 to vector<12x128xf32>
    %77 = arith.mulf %76, %75 : vector<12x128xf32>
    %78 = arith.addf %74, %77 : vector<12x128xf32>
    %79 = vector.extract_strided_slice %59 {offsets = [0, 3], sizes = [12, 128], strides = [1, 1]} : vector<12x132xf32> to vector<12x128xf32>
    %cst_23 = arith.constant 0.0183156393 : f32
    %80 = vector.broadcast %cst_23 : f32 to vector<12x128xf32>
    %81 = arith.mulf %80, %79 : vector<12x128xf32>
    %82 = arith.addf %78, %81 : vector<12x128xf32>
    %83 = vector.extract_strided_slice %59 {offsets = [0, 4], sizes = [12, 128], strides = [1, 1]} : vector<12x132xf32> to vector<12x128xf32>
    %cst_24 = arith.constant 1.12535176E-7 : f32
    %84 = vector.broadcast %cst_24 : f32 to vector<12x128xf32>
    %85 = arith.mulf %84, %83 : vector<12x128xf32>
    %86 = arith.addf %82, %85 : vector<12x128xf32>
    %87 = vector.extract_strided_slice %86 {offsets = [0, 0], sizes = [8, 128], strides = [1, 1]} : vector<12x128xf32> to vector<8x128xf32>
    %cst_25 = arith.constant 1.12535176E-7 : f32
    %88 = vector.broadcast %cst_25 : f32 to vector<8x128xf32>
    %89 = arith.mulf %88, %87 : vector<8x128xf32>
    %90 = vector.extract_strided_slice %86 {offsets = [1, 0], sizes = [8, 128], strides = [1, 1]} : vector<12x128xf32> to vector<8x128xf32>
    %cst_26 = arith.constant 0.0183156393 : f32
    %91 = vector.broadcast %cst_26 : f32 to vector<8x128xf32>
    %92 = arith.mulf %91, %90 : vector<8x128xf32>
    %93 = arith.addf %89, %92 : vector<8x128xf32>
    %94 = vector.extract_strided_slice %86 {offsets = [2, 0], sizes = [8, 128], strides = [1, 1]} : vector<12x128xf32> to vector<8x128xf32>
    %cst_27 = arith.constant 1.000000e+00 : f32
    %95 = vector.broadcast %cst_27 : f32 to vector<8x128xf32>
    %96 = arith.mulf %95, %94 : vector<8x128xf32>
    %97 = arith.addf %93, %96 : vector<8x128xf32>
    %98 = vector.extract_strided_slice %86 {offsets = [3, 0], sizes = [8, 128], strides = [1, 1]} : vector<12x128xf32> to vector<8x128xf32>
    %cst_28 = arith.constant 0.0183156393 : f32
    %99 = vector.broadcast %cst_28 : f32 to vector<8x128xf32>
    %100 = arith.mulf %99, %98 : vector<8x128xf32>
    %101 = arith.addf %97, %100 : vector<8x128xf32>
    %102 = vector.extract_strided_slice %86 {offsets = [4, 0], sizes = [8, 128], strides = [1, 1]} : vector<12x128xf32> to vector<8x128xf32>
    %cst_29 = arith.constant 1.12535176E-7 : f32
    %103 = vector.broadcast %cst_29 : f32 to vector<8x128xf32>
    %104 = arith.mulf %103, %102 : vector<8x128xf32>
    %105 = arith.addf %101, %104 : vector<8x128xf32>
    %106 = vector.extract_strided_slice %63 {offsets = [0, 0], sizes = [12, 128], strides = [1, 1]} : vector<12x132xf32> to vector<12x128xf32>
    %cst_30 = arith.constant 1.12535176E-7 : f32
    %107 = vector.broadcast %cst_30 : f32 to vector<12x128xf32>
    %108 = arith.mulf %107, %106 : vector<12x128xf32>
    %109 = vector.extract_strided_slice %63 {offsets = [0, 1], sizes = [12, 128], strides = [1, 1]} : vector<12x132xf32> to vector<12x128xf32>
    %cst_31 = arith.constant 0.0183156393 : f32
    %110 = vector.broadcast %cst_31 : f32 to vector<12x128xf32>
    %111 = arith.mulf %110, %109 : vector<12x128xf32>
    %112 = arith.addf %108, %111 : vector<12x128xf32>
    %113 = vector.extract_strided_slice %63 {offsets = [0, 2], sizes = [12, 128], strides = [1, 1]} : vector<12x132xf32> to vector<12x128xf32>
    %cst_32 = arith.constant 1.000000e+00 : f32
    %114 = vector.broadcast %cst_32 : f32 to vector<12x128xf32>
    %115 = arith.mulf %114, %113 : vector<12x128xf32>
    %116 = arith.addf %112, %115 : vector<12x128xf32>
    %117 = vector.extract_strided_slice %63 {offsets = [0, 3], sizes = [12, 128], strides = [1, 1]} : vector<12x132xf32> to vector<12x128xf32>
    %cst_33 = arith.constant 0.0183156393 : f32
    %118 = vector.broadcast %cst_33 : f32 to vector<12x128xf32>
    %119 = arith.mulf %118, %117 : vector<12x128xf32>
    %120 = arith.addf %116, %119 : vector<12x128xf32>
    %121 = vector.extract_strided_slice %63 {offsets = [0, 4], sizes = [12, 128], strides = [1, 1]} : vector<12x132xf32> to vector<12x128xf32>
    %cst_34 = arith.constant 1.12535176E-7 : f32
    %122 = vector.broadcast %cst_34 : f32 to vector<12x128xf32>
    %123 = arith.mulf %122, %121 : vector<12x128xf32>
    %124 = arith.addf %120, %123 : vector<12x128xf32>
    %125 = vector.extract_strided_slice %124 {offsets = [0, 0], sizes = [8, 128], strides = [1, 1]} : vector<12x128xf32> to vector<8x128xf32>
    %cst_35 = arith.constant 1.12535176E-7 : f32
    %126 = vector.broadcast %cst_35 : f32 to vector<8x128xf32>
    %127 = arith.mulf %126, %125 : vector<8x128xf32>
    %128 = vector.extract_strided_slice %124 {offsets = [1, 0], sizes = [8, 128], strides = [1, 1]} : vector<12x128xf32> to vector<8x128xf32>
    %cst_36 = arith.constant 0.0183156393 : f32
    %129 = vector.broadcast %cst_36 : f32 to vector<8x128xf32>
    %130 = arith.mulf %129, %128 : vector<8x128xf32>
    %131 = arith.addf %127, %130 : vector<8x128xf32>
    %132 = vector.extract_strided_slice %124 {offsets = [2, 0], sizes = [8, 128], strides = [1, 1]} : vector<12x128xf32> to vector<8x128xf32>
    %cst_37 = arith.constant 1.000000e+00 : f32
    %133 = vector.broadcast %cst_37 : f32 to vector<8x128xf32>
    %134 = arith.mulf %133, %132 : vector<8x128xf32>
    %135 = arith.addf %131, %134 : vector<8x128xf32>
    %136 = vector.extract_strided_slice %124 {offsets = [3, 0], sizes = [8, 128], strides = [1, 1]} : vector<12x128xf32> to vector<8x128xf32>
    %cst_38 = arith.constant 0.0183156393 : f32
    %137 = vector.broadcast %cst_38 : f32 to vector<8x128xf32>
    %138 = arith.mulf %137, %136 : vector<8x128xf32>
    %139 = arith.addf %135, %138 : vector<8x128xf32>
    %140 = vector.extract_strided_slice %124 {offsets = [4, 0], sizes = [8, 128], strides = [1, 1]} : vector<12x128xf32> to vector<8x128xf32>
    %cst_39 = arith.constant 1.12535176E-7 : f32
    %141 = vector.broadcast %cst_39 : f32 to vector<8x128xf32>
    %142 = arith.mulf %141, %140 : vector<8x128xf32>
    %143 = arith.addf %139, %142 : vector<8x128xf32>
    %144 = vector.extract_strided_slice %67 {offsets = [0, 0], sizes = [12, 128], strides = [1, 1]} : vector<12x132xf32> to vector<12x128xf32>
    %cst_40 = arith.constant 1.12535176E-7 : f32
    %145 = vector.broadcast %cst_40 : f32 to vector<12x128xf32>
    %146 = arith.mulf %145, %144 : vector<12x128xf32>
    %147 = vector.extract_strided_slice %67 {offsets = [0, 1], sizes = [12, 128], strides = [1, 1]} : vector<12x132xf32> to vector<12x128xf32>
    %cst_41 = arith.constant 0.0183156393 : f32
    %148 = vector.broadcast %cst_41 : f32 to vector<12x128xf32>
    %149 = arith.mulf %148, %147 : vector<12x128xf32>
    %150 = arith.addf %146, %149 : vector<12x128xf32>
    %151 = vector.extract_strided_slice %67 {offsets = [0, 2], sizes = [12, 128], strides = [1, 1]} : vector<12x132xf32> to vector<12x128xf32>
    %cst_42 = arith.constant 1.000000e+00 : f32
    %152 = vector.broadcast %cst_42 : f32 to vector<12x128xf32>
    %153 = arith.mulf %152, %151 : vector<12x128xf32>
    %154 = arith.addf %150, %153 : vector<12x128xf32>
    %155 = vector.extract_strided_slice %67 {offsets = [0, 3], sizes = [12, 128], strides = [1, 1]} : vector<12x132xf32> to vector<12x128xf32>
    %cst_43 = arith.constant 0.0183156393 : f32
    %156 = vector.broadcast %cst_43 : f32 to vector<12x128xf32>
    %157 = arith.mulf %156, %155 : vector<12x128xf32>
    %158 = arith.addf %154, %157 : vector<12x128xf32>
    %159 = vector.extract_strided_slice %67 {offsets = [0, 4], sizes = [12, 128], strides = [1, 1]} : vector<12x132xf32> to vector<12x128xf32>
    %cst_44 = arith.constant 1.12535176E-7 : f32
    %160 = vector.broadcast %cst_44 : f32 to vector<12x128xf32>
    %161 = arith.mulf %160, %159 : vector<12x128xf32>
    %162 = arith.addf %158, %161 : vector<12x128xf32>
    %163 = vector.extract_strided_slice %162 {offsets = [0, 0], sizes = [8, 128], strides = [1, 1]} : vector<12x128xf32> to vector<8x128xf32>
    %cst_45 = arith.constant 1.12535176E-7 : f32
    %164 = vector.broadcast %cst_45 : f32 to vector<8x128xf32>
    %165 = arith.mulf %164, %163 : vector<8x128xf32>
    %166 = vector.extract_strided_slice %162 {offsets = [1, 0], sizes = [8, 128], strides = [1, 1]} : vector<12x128xf32> to vector<8x128xf32>
    %cst_46 = arith.constant 0.0183156393 : f32
    %167 = vector.broadcast %cst_46 : f32 to vector<8x128xf32>
    %168 = arith.mulf %167, %166 : vector<8x128xf32>
    %169 = arith.addf %165, %168 : vector<8x128xf32>
    %170 = vector.extract_strided_slice %162 {offsets = [2, 0], sizes = [8, 128], strides = [1, 1]} : vector<12x128xf32> to vector<8x128xf32>
    %cst_47 = arith.constant 1.000000e+00 : f32
    %171 = vector.broadcast %cst_47 : f32 to vector<8x128xf32>
    %172 = arith.mulf %171, %170 : vector<8x128xf32>
    %173 = arith.addf %169, %172 : vector<8x128xf32>
    %174 = vector.extract_strided_slice %162 {offsets = [3, 0], sizes = [8, 128], strides = [1, 1]} : vector<12x128xf32> to vector<8x128xf32>
    %cst_48 = arith.constant 0.0183156393 : f32
    %175 = vector.broadcast %cst_48 : f32 to vector<8x128xf32>
    %176 = arith.mulf %175, %174 : vector<8x128xf32>
    %177 = arith.addf %173, %176 : vector<8x128xf32>
    %178 = vector.extract_strided_slice %162 {offsets = [4, 0], sizes = [8, 128], strides = [1, 1]} : vector<12x128xf32> to vector<8x128xf32>
    %cst_49 = arith.constant 1.12535176E-7 : f32
    %179 = vector.broadcast %cst_49 : f32 to vector<8x128xf32>
    %180 = arith.mulf %179, %178 : vector<8x128xf32>
    %181 = arith.addf %177, %180 : vector<8x128xf32>
    %182 = vector.extract_strided_slice %59 {offsets = [0, 0], sizes = [12, 128], strides = [1, 1]} : vector<12x132xf32> to vector<12x128xf32>
    %cst_50 = arith.constant 0.169013321 : f32
    %183 = vector.broadcast %cst_50 : f32 to vector<12x128xf32>
    %184 = arith.mulf %183, %182 : vector<12x128xf32>
    %185 = vector.extract_strided_slice %59 {offsets = [0, 1], sizes = [12, 128], strides = [1, 1]} : vector<12x132xf32> to vector<12x128xf32>
    %cst_51 = arith.constant 0.641180396 : f32
    %186 = vector.broadcast %cst_51 : f32 to vector<12x128xf32>
    %187 = arith.mulf %186, %185 : vector<12x128xf32>
    %188 = arith.addf %184, %187 : vector<12x128xf32>
    %189 = vector.extract_strided_slice %59 {offsets = [0, 2], sizes = [12, 128], strides = [1, 1]} : vector<12x132xf32> to vector<12x128xf32>
    %cst_52 = arith.constant 1.000000e+00 : f32
    %190 = vector.broadcast %cst_52 : f32 to vector<12x128xf32>
    %191 = arith.mulf %190, %189 : vector<12x128xf32>
    %192 = arith.addf %188, %191 : vector<12x128xf32>
    %193 = vector.extract_strided_slice %59 {offsets = [0, 3], sizes = [12, 128], strides = [1, 1]} : vector<12x132xf32> to vector<12x128xf32>
    %cst_53 = arith.constant 0.641180396 : f32
    %194 = vector.broadcast %cst_53 : f32 to vector<12x128xf32>
    %195 = arith.mulf %194, %193 : vector<12x128xf32>
    %196 = arith.addf %192, %195 : vector<12x128xf32>
    %197 = vector.extract_strided_slice %59 {offsets = [0, 4], sizes = [12, 128], strides = [1, 1]} : vector<12x132xf32> to vector<12x128xf32>
    %cst_54 = arith.constant 0.169013321 : f32
    %198 = vector.broadcast %cst_54 : f32 to vector<12x128xf32>
    %199 = arith.mulf %198, %197 : vector<12x128xf32>
    %200 = arith.addf %196, %199 : vector<12x128xf32>
    %201 = vector.extract_strided_slice %200 {offsets = [0, 0], sizes = [8, 128], strides = [1, 1]} : vector<12x128xf32> to vector<8x128xf32>
    %cst_55 = arith.constant 0.169013321 : f32
    %202 = vector.broadcast %cst_55 : f32 to vector<8x128xf32>
    %203 = arith.mulf %202, %201 : vector<8x128xf32>
    %204 = vector.extract_strided_slice %200 {offsets = [1, 0], sizes = [8, 128], strides = [1, 1]} : vector<12x128xf32> to vector<8x128xf32>
    %cst_56 = arith.constant 0.641180396 : f32
    %205 = vector.broadcast %cst_56 : f32 to vector<8x128xf32>
    %206 = arith.mulf %205, %204 : vector<8x128xf32>
    %207 = arith.addf %203, %206 : vector<8x128xf32>
    %208 = vector.extract_strided_slice %200 {offsets = [2, 0], sizes = [8, 128], strides = [1, 1]} : vector<12x128xf32> to vector<8x128xf32>
    %cst_57 = arith.constant 1.000000e+00 : f32
    %209 = vector.broadcast %cst_57 : f32 to vector<8x128xf32>
    %210 = arith.mulf %209, %208 : vector<8x128xf32>
    %211 = arith.addf %207, %210 : vector<8x128xf32>
    %212 = vector.extract_strided_slice %200 {offsets = [3, 0], sizes = [8, 128], strides = [1, 1]} : vector<12x128xf32> to vector<8x128xf32>
    %cst_58 = arith.constant 0.641180396 : f32
    %213 = vector.broadcast %cst_58 : f32 to vector<8x128xf32>
    %214 = arith.mulf %213, %212 : vector<8x128xf32>
    %215 = arith.addf %211, %214 : vector<8x128xf32>
    %216 = vector.extract_strided_slice %200 {offsets = [4, 0], sizes = [8, 128], strides = [1, 1]} : vector<12x128xf32> to vector<8x128xf32>
    %cst_59 = arith.constant 0.169013321 : f32
    %217 = vector.broadcast %cst_59 : f32 to vector<8x128xf32>
    %218 = arith.mulf %217, %216 : vector<8x128xf32>
    %219 = arith.addf %215, %218 : vector<8x128xf32>
    %220 = vector.extract_strided_slice %63 {offsets = [0, 0], sizes = [12, 128], strides = [1, 1]} : vector<12x132xf32> to vector<12x128xf32>
    %cst_60 = arith.constant 0.169013321 : f32
    %221 = vector.broadcast %cst_60 : f32 to vector<12x128xf32>
    %222 = arith.mulf %221, %220 : vector<12x128xf32>
    %223 = vector.extract_strided_slice %63 {offsets = [0, 1], sizes = [12, 128], strides = [1, 1]} : vector<12x132xf32> to vector<12x128xf32>
    %cst_61 = arith.constant 0.641180396 : f32
    %224 = vector.broadcast %cst_61 : f32 to vector<12x128xf32>
    %225 = arith.mulf %224, %223 : vector<12x128xf32>
    %226 = arith.addf %222, %225 : vector<12x128xf32>
    %227 = vector.extract_strided_slice %63 {offsets = [0, 2], sizes = [12, 128], strides = [1, 1]} : vector<12x132xf32> to vector<12x128xf32>
    %cst_62 = arith.constant 1.000000e+00 : f32
    %228 = vector.broadcast %cst_62 : f32 to vector<12x128xf32>
    %229 = arith.mulf %228, %227 : vector<12x128xf32>
    %230 = arith.addf %226, %229 : vector<12x128xf32>
    %231 = vector.extract_strided_slice %63 {offsets = [0, 3], sizes = [12, 128], strides = [1, 1]} : vector<12x132xf32> to vector<12x128xf32>
    %cst_63 = arith.constant 0.641180396 : f32
    %232 = vector.broadcast %cst_63 : f32 to vector<12x128xf32>
    %233 = arith.mulf %232, %231 : vector<12x128xf32>
    %234 = arith.addf %230, %233 : vector<12x128xf32>
    %235 = vector.extract_strided_slice %63 {offsets = [0, 4], sizes = [12, 128], strides = [1, 1]} : vector<12x132xf32> to vector<12x128xf32>
    %cst_64 = arith.constant 0.169013321 : f32
    %236 = vector.broadcast %cst_64 : f32 to vector<12x128xf32>
    %237 = arith.mulf %236, %235 : vector<12x128xf32>
    %238 = arith.addf %234, %237 : vector<12x128xf32>
    %239 = vector.extract_strided_slice %238 {offsets = [0, 0], sizes = [8, 128], strides = [1, 1]} : vector<12x128xf32> to vector<8x128xf32>
    %cst_65 = arith.constant 0.169013321 : f32
    %240 = vector.broadcast %cst_65 : f32 to vector<8x128xf32>
    %241 = arith.mulf %240, %239 : vector<8x128xf32>
    %242 = vector.extract_strided_slice %238 {offsets = [1, 0], sizes = [8, 128], strides = [1, 1]} : vector<12x128xf32> to vector<8x128xf32>
    %cst_66 = arith.constant 0.641180396 : f32
    %243 = vector.broadcast %cst_66 : f32 to vector<8x128xf32>
    %244 = arith.mulf %243, %242 : vector<8x128xf32>
    %245 = arith.addf %241, %244 : vector<8x128xf32>
    %246 = vector.extract_strided_slice %238 {offsets = [2, 0], sizes = [8, 128], strides = [1, 1]} : vector<12x128xf32> to vector<8x128xf32>
    %cst_67 = arith.constant 1.000000e+00 : f32
    %247 = vector.broadcast %cst_67 : f32 to vector<8x128xf32>
    %248 = arith.mulf %247, %246 : vector<8x128xf32>
    %249 = arith.addf %245, %248 : vector<8x128xf32>
    %250 = vector.extract_strided_slice %238 {offsets = [3, 0], sizes = [8, 128], strides = [1, 1]} : vector<12x128xf32> to vector<8x128xf32>
    %cst_68 = arith.constant 0.641180396 : f32
    %251 = vector.broadcast %cst_68 : f32 to vector<8x128xf32>
    %252 = arith.mulf %251, %250 : vector<8x128xf32>
    %253 = arith.addf %249, %252 : vector<8x128xf32>
    %254 = vector.extract_strided_slice %238 {offsets = [4, 0], sizes = [8, 128], strides = [1, 1]} : vector<12x128xf32> to vector<8x128xf32>
    %cst_69 = arith.constant 0.169013321 : f32
    %255 = vector.broadcast %cst_69 : f32 to vector<8x128xf32>
    %256 = arith.mulf %255, %254 : vector<8x128xf32>
    %257 = arith.addf %253, %256 : vector<8x128xf32>
    %258 = vector.extract_strided_slice %67 {offsets = [0, 0], sizes = [12, 128], strides = [1, 1]} : vector<12x132xf32> to vector<12x128xf32>
    %cst_70 = arith.constant 0.169013321 : f32
    %259 = vector.broadcast %cst_70 : f32 to vector<12x128xf32>
    %260 = arith.mulf %259, %258 : vector<12x128xf32>
    %261 = vector.extract_strided_slice %67 {offsets = [0, 1], sizes = [12, 128], strides = [1, 1]} : vector<12x132xf32> to vector<12x128xf32>
    %cst_71 = arith.constant 0.641180396 : f32
    %262 = vector.broadcast %cst_71 : f32 to vector<12x128xf32>
    %263 = arith.mulf %262, %261 : vector<12x128xf32>
    %264 = arith.addf %260, %263 : vector<12x128xf32>
    %265 = vector.extract_strided_slice %67 {offsets = [0, 2], sizes = [12, 128], strides = [1, 1]} : vector<12x132xf32> to vector<12x128xf32>
    %cst_72 = arith.constant 1.000000e+00 : f32
    %266 = vector.broadcast %cst_72 : f32 to vector<12x128xf32>
    %267 = arith.mulf %266, %265 : vector<12x128xf32>
    %268 = arith.addf %264, %267 : vector<12x128xf32>
    %269 = vector.extract_strided_slice %67 {offsets = [0, 3], sizes = [12, 128], strides = [1, 1]} : vector<12x132xf32> to vector<12x128xf32>
    %cst_73 = arith.constant 0.641180396 : f32
    %270 = vector.broadcast %cst_73 : f32 to vector<12x128xf32>
    %271 = arith.mulf %270, %269 : vector<12x128xf32>
    %272 = arith.addf %268, %271 : vector<12x128xf32>
    %273 = vector.extract_strided_slice %67 {offsets = [0, 4], sizes = [12, 128], strides = [1, 1]} : vector<12x132xf32> to vector<12x128xf32>
    %cst_74 = arith.constant 0.169013321 : f32
    %274 = vector.broadcast %cst_74 : f32 to vector<12x128xf32>
    %275 = arith.mulf %274, %273 : vector<12x128xf32>
    %276 = arith.addf %272, %275 : vector<12x128xf32>
    %277 = vector.extract_strided_slice %276 {offsets = [0, 0], sizes = [8, 128], strides = [1, 1]} : vector<12x128xf32> to vector<8x128xf32>
    %cst_75 = arith.constant 0.169013321 : f32
    %278 = vector.broadcast %cst_75 : f32 to vector<8x128xf32>
    %279 = arith.mulf %278, %277 : vector<8x128xf32>
    %280 = vector.extract_strided_slice %276 {offsets = [1, 0], sizes = [8, 128], strides = [1, 1]} : vector<12x128xf32> to vector<8x128xf32>
    %cst_76 = arith.constant 0.641180396 : f32
    %281 = vector.broadcast %cst_76 : f32 to vector<8x128xf32>
    %282 = arith.mulf %281, %280 : vector<8x128xf32>
    %283 = arith.addf %279, %282 : vector<8x128xf32>
    %284 = vector.extract_strided_slice %276 {offsets = [2, 0], sizes = [8, 128], strides = [1, 1]} : vector<12x128xf32> to vector<8x128xf32>
    %cst_77 = arith.constant 1.000000e+00 : f32
    %285 = vector.broadcast %cst_77 : f32 to vector<8x128xf32>
    %286 = arith.mulf %285, %284 : vector<8x128xf32>
    %287 = arith.addf %283, %286 : vector<8x128xf32>
    %288 = vector.extract_strided_slice %276 {offsets = [3, 0], sizes = [8, 128], strides = [1, 1]} : vector<12x128xf32> to vector<8x128xf32>
    %cst_78 = arith.constant 0.641180396 : f32
    %289 = vector.broadcast %cst_78 : f32 to vector<8x128xf32>
    %290 = arith.mulf %289, %288 : vector<8x128xf32>
    %291 = arith.addf %287, %290 : vector<8x128xf32>
    %292 = vector.extract_strided_slice %276 {offsets = [4, 0], sizes = [8, 128], strides = [1, 1]} : vector<12x128xf32> to vector<8x128xf32>
    %cst_79 = arith.constant 0.169013321 : f32
    %293 = vector.broadcast %cst_79 : f32 to vector<8x128xf32>
    %294 = arith.mulf %293, %292 : vector<8x128xf32>
    %295 = arith.addf %291, %294 : vector<8x128xf32>
    %cst_80 = arith.constant 0.172657147 : f32
    %296 = vector.broadcast %cst_80 : f32 to vector<8x128xf32>
    %297 = arith.mulf %296, %105 : vector<8x128xf32>
    %cst_81 = arith.constant 0.000000e+00 : f32
    %298 = vector.broadcast %cst_81 : f32 to vector<8x128xf32>
    %299 = arith.mulf %298, %219 : vector<8x128xf32>
    %300 = arith.addf %297, %299 : vector<8x128xf32>
    %cst_82 = arith.constant 0.000000e+00 : f32
    %301 = vector.broadcast %cst_82 : f32 to vector<8x128xf32>
    %302 = arith.mulf %301, %143 : vector<8x128xf32>
    %303 = arith.addf %300, %302 : vector<8x128xf32>
    %cst_83 = arith.constant -0.172657147 : f32
    %304 = vector.broadcast %cst_83 : f32 to vector<8x128xf32>
    %305 = arith.mulf %304, %257 : vector<8x128xf32>
    %306 = arith.addf %303, %305 : vector<8x128xf32>
    %cst_84 = arith.constant 0.000000e+00 : f32
    %307 = vector.broadcast %cst_84 : f32 to vector<8x128xf32>
    %308 = arith.mulf %307, %181 : vector<8x128xf32>
    %309 = arith.addf %306, %308 : vector<8x128xf32>
    %cst_85 = arith.constant 0.000000e+00 : f32
    %310 = vector.broadcast %cst_85 : f32 to vector<8x128xf32>
    %311 = arith.mulf %310, %295 : vector<8x128xf32>
    %312 = arith.addf %309, %311 : vector<8x128xf32>
    %c0_86 = arith.constant 0 : index
    %c0_87 = arith.constant 0 : index
    %c0_88 = arith.constant 0 : index
    %c0_89 = arith.constant 0 : index
    %313 = vector.load %arg3[%c0_86, %c0_87, %c0_88, %c0_89] : memref<1x4x8x128xf32, #tpu.memory_space<vmem>>, vector<1x1x8x128xf32>
    %314 = vector.shape_cast %313 : vector<1x1x8x128xf32> to vector<8x128xf32>
    %315 = vector.shape_cast %312 : vector<8x128xf32> to vector<1x1x8x128xf32>
    tpu.vector_store %arg3[%c0_86, %c0_87, %c0_88, %c0_89], %315 {strides = array<i32>} : memref<1x4x8x128xf32, #tpu.memory_space<vmem>>, vector<1x1x8x128xf32>,
    %cst_90 = arith.constant 0.000000e+00 : f32
    %316 = vector.broadcast %cst_90 : f32 to vector<8x128xf32>
    %317 = arith.mulf %316, %105 : vector<8x128xf32>
    %cst_91 = arith.constant -0.172657147 : f32
    %318 = vector.broadcast %cst_91 : f32 to vector<8x128xf32>
    %319 = arith.mulf %318, %219 : vector<8x128xf32>
    %320 = arith.addf %317, %319 : vector<8x128xf32>
    %cst_92 = arith.constant 0.172657147 : f32
    %321 = vector.broadcast %cst_92 : f32 to vector<8x128xf32>
    %322 = arith.mulf %321, %143 : vector<8x128xf32>
    %323 = arith.addf %320, %322 : vector<8x128xf32>
    %cst_93 = arith.constant 0.000000e+00 : f32
    %324 = vector.broadcast %cst_93 : f32 to vector<8x128xf32>
    %325 = arith.mulf %324, %257 : vector<8x128xf32>
    %326 = arith.addf %323, %325 : vector<8x128xf32>
    %cst_94 = arith.constant 0.000000e+00 : f32
    %327 = vector.broadcast %cst_94 : f32 to vector<8x128xf32>
    %328 = arith.mulf %327, %181 : vector<8x128xf32>
    %329 = arith.addf %326, %328 : vector<8x128xf32>
    %cst_95 = arith.constant 0.000000e+00 : f32
    %330 = vector.broadcast %cst_95 : f32 to vector<8x128xf32>
    %331 = arith.mulf %330, %295 : vector<8x128xf32>
    %332 = arith.addf %329, %331 : vector<8x128xf32>
    %c0_96 = arith.constant 0 : index
    %c1_97 = arith.constant 1 : index
    %c0_98 = arith.constant 0 : index
    %c0_99 = arith.constant 0 : index
    %333 = vector.load %arg3[%c0_96, %c1_97, %c0_98, %c0_99] : memref<1x4x8x128xf32, #tpu.memory_space<vmem>>, vector<1x1x8x128xf32>
    %334 = vector.shape_cast %333 : vector<1x1x8x128xf32> to vector<8x128xf32>
    %335 = vector.shape_cast %332 : vector<8x128xf32> to vector<1x1x8x128xf32>
    tpu.vector_store %arg3[%c0_96, %c1_97, %c0_98, %c0_99], %335 {strides = array<i32>} : memref<1x4x8x128xf32, #tpu.memory_space<vmem>>, vector<1x1x8x128xf32>,
    %cst_100 = arith.constant 0.000000e+00 : f32
    %336 = vector.broadcast %cst_100 : f32 to vector<8x128xf32>
    %337 = arith.mulf %336, %105 : vector<8x128xf32>
    %cst_101 = arith.constant -0.0863285735 : f32
    %338 = vector.broadcast %cst_101 : f32 to vector<8x128xf32>
    %339 = arith.mulf %338, %219 : vector<8x128xf32>
    %340 = arith.addf %337, %339 : vector<8x128xf32>
    %cst_102 = arith.constant 0.000000e+00 : f32
    %341 = vector.broadcast %cst_102 : f32 to vector<8x128xf32>
    %342 = arith.mulf %341, %143 : vector<8x128xf32>
    %343 = arith.addf %340, %342 : vector<8x128xf32>
    %cst_103 = arith.constant -0.0863285735 : f32
    %344 = vector.broadcast %cst_103 : f32 to vector<8x128xf32>
    %345 = arith.mulf %344, %257 : vector<8x128xf32>
    %346 = arith.addf %343, %345 : vector<8x128xf32>
    %cst_104 = arith.constant 0.172657147 : f32
    %347 = vector.broadcast %cst_104 : f32 to vector<8x128xf32>
    %348 = arith.mulf %347, %181 : vector<8x128xf32>
    %349 = arith.addf %346, %348 : vector<8x128xf32>
    %cst_105 = arith.constant 0.000000e+00 : f32
    %350 = vector.broadcast %cst_105 : f32 to vector<8x128xf32>
    %351 = arith.mulf %350, %295 : vector<8x128xf32>
    %352 = arith.addf %349, %351 : vector<8x128xf32>
    %c0_106 = arith.constant 0 : index
    %c2_107 = arith.constant 2 : index
    %c0_108 = arith.constant 0 : index
    %c0_109 = arith.constant 0 : index
    %353 = vector.load %arg3[%c0_106, %c2_107, %c0_108, %c0_109] : memref<1x4x8x128xf32, #tpu.memory_space<vmem>>, vector<1x1x8x128xf32>
    %354 = vector.shape_cast %353 : vector<1x1x8x128xf32> to vector<8x128xf32>
    %355 = vector.shape_cast %352 : vector<8x128xf32> to vector<1x1x8x128xf32>
    tpu.vector_store %arg3[%c0_106, %c2_107, %c0_108, %c0_109], %355 {strides = array<i32>} : memref<1x4x8x128xf32, #tpu.memory_space<vmem>>, vector<1x1x8x128xf32>,
    %356 = arith.addf %59, %63 : vector<12x132xf32>
    %357 = arith.addf %356, %67 : vector<12x132xf32>
    %cst_110 = arith.constant 0.333333343 : f32
    %358 = vector.broadcast %cst_110 : f32 to vector<12x132xf32>
    %359 = arith.mulf %357, %358 : vector<12x132xf32>
    %360 = vector.extract_strided_slice %359 {offsets = [0, 0], sizes = [12, 128], strides = [1, 1]} : vector<12x132xf32> to vector<12x128xf32>
    %cst_111 = arith.constant 1.49453381E-5 : f32
    %361 = vector.broadcast %cst_111 : f32 to vector<12x128xf32>
    %362 = arith.mulf %361, %360 : vector<12x128xf32>
    %363 = vector.extract_strided_slice %359 {offsets = [0, 1], sizes = [12, 128], strides = [1, 1]} : vector<12x132xf32> to vector<12x128xf32>
    %cst_112 = arith.constant 0.0621765256 : f32
    %364 = vector.broadcast %cst_112 : f32 to vector<12x128xf32>
    %365 = arith.mulf %364, %363 : vector<12x128xf32>
    %366 = arith.addf %362, %365 : vector<12x128xf32>
    %367 = vector.extract_strided_slice %359 {offsets = [0, 2], sizes = [12, 128], strides = [1, 1]} : vector<12x132xf32> to vector<12x128xf32>
    %cst_113 = arith.constant 1.000000e+00 : f32
    %368 = vector.broadcast %cst_113 : f32 to vector<12x128xf32>
    %369 = arith.mulf %368, %367 : vector<12x128xf32>
    %370 = arith.addf %366, %369 : vector<12x128xf32>
    %371 = vector.extract_strided_slice %359 {offsets = [0, 3], sizes = [12, 128], strides = [1, 1]} : vector<12x132xf32> to vector<12x128xf32>
    %cst_114 = arith.constant 0.0621765256 : f32
    %372 = vector.broadcast %cst_114 : f32 to vector<12x128xf32>
    %373 = arith.mulf %372, %371 : vector<12x128xf32>
    %374 = arith.addf %370, %373 : vector<12x128xf32>
    %375 = vector.extract_strided_slice %359 {offsets = [0, 4], sizes = [12, 128], strides = [1, 1]} : vector<12x132xf32> to vector<12x128xf32>
    %cst_115 = arith.constant 1.49453381E-5 : f32
    %376 = vector.broadcast %cst_115 : f32 to vector<12x128xf32>
    %377 = arith.mulf %376, %375 : vector<12x128xf32>
    %378 = arith.addf %374, %377 : vector<12x128xf32>
    %379 = vector.extract_strided_slice %378 {offsets = [0, 0], sizes = [8, 128], strides = [1, 1]} : vector<12x128xf32> to vector<8x128xf32>
    %cst_116 = arith.constant 1.49453381E-5 : f32
    %380 = vector.broadcast %cst_116 : f32 to vector<8x128xf32>
    %381 = arith.mulf %380, %379 : vector<8x128xf32>
    %382 = vector.extract_strided_slice %378 {offsets = [1, 0], sizes = [8, 128], strides = [1, 1]} : vector<12x128xf32> to vector<8x128xf32>
    %cst_117 = arith.constant 0.0621765256 : f32
    %383 = vector.broadcast %cst_117 : f32 to vector<8x128xf32>
    %384 = arith.mulf %383, %382 : vector<8x128xf32>
    %385 = arith.addf %381, %384 : vector<8x128xf32>
    %386 = vector.extract_strided_slice %378 {offsets = [2, 0], sizes = [8, 128], strides = [1, 1]} : vector<12x128xf32> to vector<8x128xf32>
    %cst_118 = arith.constant 1.000000e+00 : f32
    %387 = vector.broadcast %cst_118 : f32 to vector<8x128xf32>
    %388 = arith.mulf %387, %386 : vector<8x128xf32>
    %389 = arith.addf %385, %388 : vector<8x128xf32>
    %390 = vector.extract_strided_slice %378 {offsets = [3, 0], sizes = [8, 128], strides = [1, 1]} : vector<12x128xf32> to vector<8x128xf32>
    %cst_119 = arith.constant 0.0621765256 : f32
    %391 = vector.broadcast %cst_119 : f32 to vector<8x128xf32>
    %392 = arith.mulf %391, %390 : vector<8x128xf32>
    %393 = arith.addf %389, %392 : vector<8x128xf32>
    %394 = vector.extract_strided_slice %378 {offsets = [4, 0], sizes = [8, 128], strides = [1, 1]} : vector<12x128xf32> to vector<8x128xf32>
    %cst_120 = arith.constant 1.49453381E-5 : f32
    %395 = vector.broadcast %cst_120 : f32 to vector<8x128xf32>
    %396 = arith.mulf %395, %394 : vector<8x128xf32>
    %397 = arith.addf %393, %396 : vector<8x128xf32>
    %398 = vector.extract_strided_slice %359 {offsets = [0, 0], sizes = [12, 128], strides = [1, 1]} : vector<12x132xf32> to vector<12x128xf32>
    %cst_121 = arith.constant 0.290960461 : f32
    %399 = vector.broadcast %cst_121 : f32 to vector<12x128xf32>
    %400 = arith.mulf %399, %398 : vector<12x128xf32>
    %401 = vector.extract_strided_slice %359 {offsets = [0, 1], sizes = [12, 128], strides = [1, 1]} : vector<12x132xf32> to vector<12x128xf32>
    %cst_122 = arith.constant 0.734443664 : f32
    %402 = vector.broadcast %cst_122 : f32 to vector<12x128xf32>
    %403 = arith.mulf %402, %401 : vector<12x128xf32>
    %404 = arith.addf %400, %403 : vector<12x128xf32>
    %405 = vector.extract_strided_slice %359 {offsets = [0, 2], sizes = [12, 128], strides = [1, 1]} : vector<12x132xf32> to vector<12x128xf32>
    %cst_123 = arith.constant 1.000000e+00 : f32
    %406 = vector.broadcast %cst_123 : f32 to vector<12x128xf32>
    %407 = arith.mulf %406, %405 : vector<12x128xf32>
    %408 = arith.addf %404, %407 : vector<12x128xf32>
    %409 = vector.extract_strided_slice %359 {offsets = [0, 3], sizes = [12, 128], strides = [1, 1]} : vector<12x132xf32> to vector<12x128xf32>
    %cst_124 = arith.constant 0.734443664 : f32
    %410 = vector.broadcast %cst_124 : f32 to vector<12x128xf32>
    %411 = arith.mulf %410, %409 : vector<12x128xf32>
    %412 = arith.addf %408, %411 : vector<12x128xf32>
    %413 = vector.extract_strided_slice %359 {offsets = [0, 4], sizes = [12, 128], strides = [1, 1]} : vector<12x132xf32> to vector<12x128xf32>
    %cst_125 = arith.constant 0.290960461 : f32
    %414 = vector.broadcast %cst_125 : f32 to vector<12x128xf32>
    %415 = arith.mulf %414, %413 : vector<12x128xf32>
    %416 = arith.addf %412, %415 : vector<12x128xf32>
    %417 = vector.extract_strided_slice %416 {offsets = [0, 0], sizes = [8, 128], strides = [1, 1]} : vector<12x128xf32> to vector<8x128xf32>
    %cst_126 = arith.constant 0.290960461 : f32
    %418 = vector.broadcast %cst_126 : f32 to vector<8x128xf32>
    %419 = arith.mulf %418, %417 : vector<8x128xf32>
    %420 = vector.extract_strided_slice %416 {offsets = [1, 0], sizes = [8, 128], strides = [1, 1]} : vector<12x128xf32> to vector<8x128xf32>
    %cst_127 = arith.constant 0.734443664 : f32
    %421 = vector.broadcast %cst_127 : f32 to vector<8x128xf32>
    %422 = arith.mulf %421, %420 : vector<8x128xf32>
    %423 = arith.addf %419, %422 : vector<8x128xf32>
    %424 = vector.extract_strided_slice %416 {offsets = [2, 0], sizes = [8, 128], strides = [1, 1]} : vector<12x128xf32> to vector<8x128xf32>
    %cst_128 = arith.constant 1.000000e+00 : f32
    %425 = vector.broadcast %cst_128 : f32 to vector<8x128xf32>
    %426 = arith.mulf %425, %424 : vector<8x128xf32>
    %427 = arith.addf %423, %426 : vector<8x128xf32>
    %428 = vector.extract_strided_slice %416 {offsets = [3, 0], sizes = [8, 128], strides = [1, 1]} : vector<12x128xf32> to vector<8x128xf32>
    %cst_129 = arith.constant 0.734443664 : f32
    %429 = vector.broadcast %cst_129 : f32 to vector<8x128xf32>
    %430 = arith.mulf %429, %428 : vector<8x128xf32>
    %431 = arith.addf %427, %430 : vector<8x128xf32>
    %432 = vector.extract_strided_slice %416 {offsets = [4, 0], sizes = [8, 128], strides = [1, 1]} : vector<12x128xf32> to vector<8x128xf32>
    %cst_130 = arith.constant 0.290960461 : f32
    %433 = vector.broadcast %cst_130 : f32 to vector<8x128xf32>
    %434 = arith.mulf %433, %432 : vector<8x128xf32>
    %435 = arith.addf %431, %434 : vector<8x128xf32>
    %436 = arith.subf %397, %435 : vector<8x128xf32>
    %cst_131 = arith.constant 0.124328718 : f32
    %437 = vector.broadcast %cst_131 : f32 to vector<8x128xf32>
    %438 = arith.mulf %436, %437 : vector<8x128xf32>
    %c0_132 = arith.constant 0 : index
    %c3 = arith.constant 3 : index
    %c0_133 = arith.constant 0 : index
    %c0_134 = arith.constant 0 : index
    %439 = vector.load %arg3[%c0_132, %c3, %c0_133, %c0_134] : memref<1x4x8x128xf32, #tpu.memory_space<vmem>>, vector<1x1x8x128xf32>
    %440 = vector.shape_cast %439 : vector<1x1x8x128xf32> to vector<8x128xf32>
    %441 = vector.shape_cast %438 : vector<8x128xf32> to vector<1x1x8x128xf32>
    tpu.vector_store %arg3[%c0_132, %c3, %c0_133, %c0_134], %441 {strides = array<i32>} : memref<1x4x8x128xf32, #tpu.memory_space<vmem>>, vector<1x1x8x128xf32>,
    return
  }
  func.func @transform_0(%arg0: i32, %arg1: i32) -> (i32, i32, i32, i32) {
    %c0_i32 = arith.constant 0 : i32
    %c0_i32_0 = arith.constant 0 : i32
    %c0_i32_1 = arith.constant 0 : i32
    %c0_i32_2 = arith.constant 0 : i32
    return %arg0, %c0_i32, %c0_i32_0, %c0_i32_1 : i32, i32, i32, i32
  }
  func.func @transform_1(%arg0: i32, %arg1: i32) -> (i32, i32, i32, i32) {
    %c0_i32 = arith.constant 0 : i32
    %c0_i32_0 = arith.constant 0 : i32
    %c0_i32_1 = arith.constant 0 : i32
    return %arg0, %c0_i32, %arg1, %c0_i32_0 : i32, i32, i32, i32
  }
}

</mosaic_0001>

<bundles_post_ra>
// kernel: forward.1
= control target key start
LH: loop header
LB: loop body
LE: loop exit
PB: predicated region body
PF: predicated region fallthrough
CT: control target
= control target key end

     0   :  { %6 = vsyncpa [#allocation3], 0  ;;  %s3812_s0 = inlined_call_operand.vmem [shape: f32[2,3,24,136], index: 0, kind: input, shape index: {}]   ;;  %s3813_s1 = inlined_call_operand.hbm [shape: f32[2,4,16,128], index: 1, kind: output, shape index: {}]  }
   0x1   :  { %8 = vsyncpa [#allocation3 + $0x1], 0  ;;  %s2237_s6 = smov 0   ;;  %s2239_s7 = smov 0  }
   0x2   :  { %s2241_s8 = smov 0   ;;  %s2243_s9 = smov 0  }
   0x3   :  { %s2245_s10 = smov 0   ;;  %s2247_s11 = smov 0  }
   0x4   :  { %s2249_s12 = smov 0   ;;  %s2251_s13 = smov 0  }
   0x5 LB: > { %s1986_s14 = sadd.s32 4294967295, %s2216_s13   ;;  %s1987_s15 = sadd.s32 4294967294, %s2216_s13   ;;  %s2216_s13 = sphi %s2251_s13, %s14_s13   ;;  %s2212_s12 = sphi %s2249_s12, %s4007_s12   ;;  %s2208_s11 = sphi %s2247_s11, %s4006_s11   ;;  %s2204_s10 = sphi %s2245_s10, %s4005_s10   ;;  %s2200_s9 = sphi %s2243_s9, %s4004_s9   ;;  %s2196_s8 = sphi %s2241_s8, %s4003_s8   ;;  %s2192_s7 = sphi %s2239_s7, %s4002_s7   ;;  %s2188_s6 = sphi %s2237_s6, %s4001_s6  }
   0x6   : > { %s23_s16 = sadd.s32 1, %s2208_s11  ;;  %s26_s17 = sadd.s32 1, %s2212_s12 }
   0x7   : > { %p24_p0 = scmp.ge.s32.totalorder %s23_s16, 2  ;;  %p71_p1 = scmp.ne.s32.totalorder %s2196_s8, %s2192_s7 }
   0x8   : > { %p72_p2 = scmp.eq.s32.totalorder %s1986_s14, 3  ;;  %p77_p5 = scmp.ne.s32.totalorder %s2192_s7, %s2188_s6 }
   0x9   : > { %s4009_s16 = smov (%p24_p0, %s23_s16), 0  ;;  %s4011_s17 = smov (!%p24_p0, %s26_s17), %s2212_s12 }
   0xa   : > { %s57_s18 = ssub.s32 %s2208_s11, %s4009_s16  ;;  %p2288_p3 = por %p72_p2, %p71_p1 }
   0xb   : > { %p28_p4 = scmp.ge.s32.totalorder %s4011_s17, 2  ;;  %p78_p6 = scmp.eq.s32.totalorder %s1987_s15, 3 }
   0xc   : > { %p1990_p7 = scmp.ge.s32.totalorder %s2216_s13, 1  ;;  %p104_p9 = scmp.lt.s32.totalorder %s2216_s13, 5 }
   0xd   : > { %s4013_s17 = smov (%p28_p4, %s4011_s17), 0  ;;  %p2297_p8 = por %p78_p6, %p77_p5 }
   0xe   : > { %s56_s21 = ssub.s32 %s2212_s12, %s4013_s17  ;;  %s61_s22 = sadd.s32 1, %s2196_s8 }
   0xf   : > { %s58_s23 = sor.u32 %s57_s18, %s56_s21  ;;  %p105_p10 = pnand %p1990_p7, %p104_p9 }
  0x10   : > { %p59_p11 = scmp.eq.s32.totalorder %s58_s23, 0 }
  0x11   : > { %108 = sbr.rel (%p105_p10) target bundleno = 865 (0x361), region = 24 }
  0x12   : > { %s2306_s24 = scalar_select %p59_p11, %s2196_s8, %s61_s22  }
  0x18   : > { %p124_p12 = scmp.lt.s32.totalorder %s2204_s10, 1  ;;  %s1993_s25 = sshll.u32 %s2200_s9, 3  ;;  %vm185_vm0 = vcmask 1039360   ;;  %vm212_vm1 = vcmask 1031168   ;;  %vm231_vm2 = vcmask 1022976   ;;  %vm254_vm3 = vcmask 1014784  }
  0x19   : > { %s130_s26 = sshra.s32 %s1993_s25, 3  ;;  %s2218_s5 = smov 127   ;;  %vm277_vm4 = vcmask 1046528   ;;  %vm300_vm5 = vcmask 1045504   ;;  %vm315_vm6 = vcmask 1044480   ;;  %vm334_vm7 = vcmask 1043456  }
  0x1a   : > { %s125_s27 = scalar_select %p124_p12, %s2204_s10, 1  ;;  %vm361_vm8 = vcmask 1041408   ;;  %vm376_vm9 = vcmask 15360  }
  0x1b   : > { %s2031_s29 = sshll.u32 %s130_s26, 4  ;;  %s2219_s14 = smov 126  }
  0x1c   : > { %s2034_s28 = smul.u32 144, %s125_s27  ;;  %s2220_s15 = smov 125  }
  0x1d   : > { %s2221_s18 = smov 124   ;;  %s2222_s21 = smov 2  }
  0x1e   : > { %s128_s3 = scalar_lea.vmem %s3812_s0, %s2034_s28  ;;  %s121_s22 = sand.u32 1, %s2192_s7  }
  0x1f   : > { %s134_s4 = scalar_lea.vmem %s128_s3, %s2031_s29  ;;  %s1991_s23 = sshll.u32 %s121_s22, 5 }
  0x20   : > { %v2314_v0 = vld [vmem:[%s134_s4 + $0x10] sm:$0xff]  ;;  %v2316_v1 = vld [vmem:[%s134_s4 + $0x40] sm:$0xff]  ;;  %v2330_v8 = vld [vmem:[%s134_s4 + $0x18] sm:$0xff]  ;;  %s3731_s25 = scalar_lea.vmem [#allocation2], %s1991_s23  ;;  %s2027_s26 = sshll.u32 %s2204_s10, 3 }
  0x21   : > { %v2318_v2 = vld [vmem:[%s134_s4 + $0x70] sm:$0xff]  ;;  %v155_v3 = vadd.f32 %v2316_v1, %v2314_v0  ;;  %v2322_v4 = vld [vmem:[%s134_s4] sm:$0xff]  ;;  %v2332_v9 = vld [vmem:[%s134_s4 + $0x48] sm:$0xff]  ;;  %s1898_s27 = sadd.s32 %s2200_s9, %s2027_s26  ;;  %s1901_s28 = sshll.u32 %s3731_s25, 4  ;;  %s3748_s28 = int_to_ptr.vmem [resolvable:$true] %s1901_s28 }
  0x22   : > { %v2324_v5 = vld [vmem:[%s134_s4 + $0x30] sm:$0xff]  ;;  %v2326_v6 = vld [vmem:[%s134_s4 + $0x60] sm:$0xff]  ;;  %v2334_v10 = vld [vmem:[%s134_s4 + $0x78] sm:$0xff]  ;;  %v156_v12 = vadd.f32 %v2332_v9, %v2330_v8  ;;  %s2028_s29 = sshll.u32 %s1898_s27, 7  ;;  %s3760_s9 = scalar_lea.sflag [#allocation3], %s121_s22 }
  0x23   : > { %v153_v7 = vadd.f32 %v2324_v5, %v2322_v4  ;;  %v159_v11 = vadd.f32 %v2318_v2, %v155_v3  ;;  %v2339_v13 = vld [vmem:[%s134_s4 + $0x8] sm:$0xff]  ;;  %v2341_v14 = vld [vmem:[%s134_s4 + $0x38] sm:$0xff]  ;;  %s3754_s2 = scalar_lea.hbm %s3813_s1, %s2028_s29  ;;  %s2122_s3 = scalar_lea.vmem %s3748_s28, 512 }
  0x24   : > { %v2343_v15 = vld [vmem:[%s134_s4 + $0x68] sm:$0xff]  ;;  %v154_v17 = vadd.f32 %v2341_v14, %v2339_v13  ;;  %v160_v19 = vadd.f32 %v2334_v10, %v156_v12  ;;  %p2123_p13 = scmp.ne.s32.totalorder %s3748_s28, %s2122_s3  ;;  %s2223_s4 = smov [#allocation2]  }
  0x25   : > { %v157_v16 = vadd.f32 %v2326_v6, %v153_v7  ;;  %v163_v18 = vmul.f32 0.33333334, %v159_v11 }
  0x26   : > { %v158_v21 = vadd.f32 %v2343_v15, %v154_v17  ;;  %v164_v23 = vmul.f32 0.33333334, %v160_v19  ;;  %p2124_p0 = pnand %p2123_p13, %p2288_p3 }
  0x27   : > { %v161_v20 = vmul.f32 0.33333334, %v157_v16  ;;  %v171_v22 = vmul.f32 0.23647602, %v163_v18  ;;  %v198_v31 = vmul.f32 0.30364123, %v163_v18 }
  0x28   : > { %v162_v25 = vmul.f32 0.33333334, %v158_v21  ;;  %v172_v26 = vmul.f32 0.23647602, %v164_v23  ;;  %v199_v30 = vmul.f32 0.30364123, %v164_v23  ;;  %p2125_p1 = pneg %p2124_p0 }
  0x29   : > { %v169_v24 = vmul.f32 0.23647602, %v161_v20  ;;  %181 = vrot.lane.b32.xlu1 %v171_v22, %s2218_s5  ;;  %v196_v29 = vmul.f32 0.30364123, %v161_v20  ;;  %v165_v33 = vmul.f32 0.111703366, %v161_v20 }
  0x2a   : > { %v170_v27 = vmul.f32 0.23647602, %v162_v25  ;;  %v197_v28 = vmul.f32 0.30364123, %v162_v25  ;;  %v166_v32 = vmul.f32 0.111703366, %v162_v25 }
  0x2b   : > { %177 = vrot.lane.b32.xlu0 %v169_v24, %s2218_s5  ;;  %v168_v34 = vmul.f32 0.111703366, %v164_v23  ;;  %v167_v35 = vmul.f32 0.111703366, %v163_v18 }
  0x2d   : > { %183 = vrot.lane.b32.xlu1 %v172_v26, %s2218_s5 }
  0x2f   : > { %179 = vrot.lane.b32.xlu0 %v170_v27, %s2218_s5 }
  0x31   : > { %206 = vrot.lane.b32.xlu1 %v197_v28, %s2219_s14 }
  0x33   : > { %204 = vrot.lane.b32.xlu0 %v196_v29, %s2219_s14 }
  0x35   : > { %210 = vrot.lane.b32.xlu1 %v199_v30, %s2219_s14 }
  0x37   : > { %208 = vrot.lane.b32.xlu0 %v198_v31, %s2219_s14 }
  0x39   : > { %225 = vrot.lane.b32.xlu1 %v170_v27, %s2220_s15 }
  0x3b   : > { %223 = vrot.lane.b32.xlu0 %v169_v24, %s2220_s15 }
  0x3d   : > { %229 = vrot.lane.b32.xlu1 %v172_v26, %s2220_s15 }
  0x3f   : > { %227 = vrot.lane.b32.xlu0 %v171_v22, %s2220_s15 }
  0x41   : > { %248 = vrot.lane.b32.xlu1 %v166_v32, %s2221_s18 }
  0x43   : > { %246 = vrot.lane.b32.xlu0 %v165_v33, %s2221_s18 }
  0x45   : > { %252 = vrot.lane.b32.xlu1 %v168_v34, %s2221_s18 }
  0x47   : > { %250 = vrot.lane.b32.xlu0 %v167_v35, %s2221_s18 }
  0x9b   : > { %v182_v36 = vpop.permute.xlu1 %181 }
  0x9d   : > { %v178_v37 = vpop.permute.xlu0 %177 }
  0x9f   : > { %v184_v38 = vpop.permute.xlu1 %183 }
  0xa0   : > { %v187_v53 = vsel %vm185_vm0, %v182_v36, %v184_v38  ;;  %v195_v54 = vadd.f32 %v184_v38, %v168_v34 }
  0xa1   : > { %v180_v39 = vpop.permute.xlu0 %179  ;;  %v194_v3 = vadd.f32 %v187_v53, %v167_v35 }
  0xa2   : > { %v186_v46 = vsel %vm185_vm0, %v178_v37, %v180_v39  ;;  %v193_v47 = vadd.f32 %v180_v39, %v166_v32 }
  0xa3   : > { %v207_v40 = vpop.permute.xlu1 %206  ;;  %v192_v52 = vadd.f32 %v186_v46, %v165_v33 }
  0xa4   : > { %v220_v50 = vadd.f32 %v207_v40, %v193_v47 }
  0xa5   : > { %v205_v41 = vpop.permute.xlu0 %204 }
  0xa6   : > { %v213_v51 = vsel %vm212_vm1, %v205_v41, %v207_v40 }
  0xa7   : > { %v211_v42 = vpop.permute.xlu1 %210  ;;  %v219_v58 = vadd.f32 %v213_v51, %v192_v52 }
  0xa8   : > { %v222_v60 = vadd.f32 %v211_v42, %v195_v54 }
  0xa9   : > { %v209_v43 = vpop.permute.xlu0 %208 }
  0xaa   : > { %v214_v61 = vsel %vm212_vm1, %v209_v43, %v211_v42 }
  0xab   : > { %v226_v44 = vpop.permute.xlu1 %225  ;;  %v221_v17 = vadd.f32 %v214_v61, %v194_v3 }
  0xac   : > { %v239_v55 = vadd.f32 %v226_v44, %v220_v50 }
  0xad   : > { %v224_v45 = vpop.permute.xlu0 %223 }
  0xae   : > { %v232_v56 = vsel %vm231_vm2, %v224_v45, %v226_v44 }
  0xaf   : > { %v230_v48 = vpop.permute.xlu1 %229  ;;  %v238_v7 = vadd.f32 %v232_v56, %v219_v58 }
  0xb0   : > { %v241_v11 = vadd.f32 %v230_v48, %v222_v60 }
  0xb1   : > { %v228_v49 = vpop.permute.xlu0 %227 }
  0xb2   : > { %v233_v12 = vsel %vm231_vm2, %v228_v49, %v230_v48 }
  0xb3   : > { %v249_v57 = vpop.permute.xlu1 %248  ;;  %v240_v23 = vadd.f32 %v233_v12, %v221_v17 }
  0xb4   : > { %v262_v62 = vadd.f32 %v249_v57, %v239_v55 }
  0xb5   : > { %v247_v59 = vpop.permute.xlu0 %246 }
  0xb6   : > { %v255_v63 = vsel %vm254_vm3, %v247_v59, %v249_v57  ;;  %v270_v20 = vmul.f32 0.23647602, %v262_v62  ;;  %v293_v21 = vmul.f32 0.30364123, %v262_v62  ;;  %v266_v25 = vmul.f32 0.111703366, %v262_v62 }
  0xb7   : > { %v253_v16 = vpop.permute.xlu1 %252  ;;  %v261_v18 = vadd.f32 %v255_v63, %v238_v7 }
  0xb8   : > { %v264_v22 = vadd.f32 %v253_v16, %v241_v11  ;;  %v281_v30 = vrot.slane %v270_v20, 1  ;;  %v304_v31 = vrot.slane %v293_v21, 2  ;;  %v319_v32 = vrot.slane %v270_v20, 3 }
  0xb9   : > { %v251_v19 = vpop.permute.xlu0 %250  ;;  %v269_v26 = vmul.f32 0.23647602, %v261_v18  ;;  %v292_v33 = vmul.f32 0.30364123, %v261_v18  ;;  %v338_v36 = vrot.slane %v266_v25, 4 }
  0xba   : > { %v256_v24 = vsel %vm254_vm3, %v251_v19, %v253_v16  ;;  %v272_v27 = vmul.f32 0.23647602, %v264_v22  ;;  %v295_v28 = vmul.f32 0.30364123, %v264_v22  ;;  %v268_v34 = vmul.f32 0.111703366, %v264_v22 }
  0xbb   : > { %v263_v29 = vadd.f32 %v256_v24, %v240_v23  ;;  %v265_v40 = vmul.f32 0.111703366, %v261_v18  ;;  %v278_v41 = vrot.slane %v269_v26, 1  ;;  %v301_v48 = vrot.slane %v292_v33, 2 }
  0xbc   : > { %v282_v35 = vrot.slane %v272_v27, 1  ;;  %v305_v37 = vrot.slane %v295_v28, 2  ;;  %v320_v44 = vrot.slane %v272_v27, 3  ;;  %v339_v50 = vrot.slane %v268_v34, 4 }
  0xbd   : > { %v271_v38 = vmul.f32 0.23647602, %v263_v29  ;;  %v294_v39 = vmul.f32 0.30364123, %v263_v29  ;;  %v267_v45 = vmul.f32 0.111703366, %v263_v29 }
  0xbe   : > { %v283_v42 = vsel %vm277_vm4, %v281_v30, %v282_v35  ;;  %v291_v43 = vadd.f32 %v282_v35, %v268_v34  ;;  %v306_v55 = vsel %vm300_vm5, %v304_v31, %v305_v37  ;;  %v316_v56 = vrot.slane %v269_v26, 3 }
  0xbf   : > { %v279_v46 = vrot.slane %v271_v38, 1  ;;  %v302_v47 = vrot.slane %v294_v39, 2  ;;  %v289_v51 = vadd.f32 %v283_v42, %v266_v25  ;;  %v317_v54 = vrot.slane %v271_v38, 3 }
  0xc0   : > { %v314_v49 = vadd.f32 %v305_v37, %v291_v43  ;;  %v336_v62 = vrot.slane %v267_v45, 4  ;;  %v321_v63 = vsel %vm315_vm6, %v319_v32, %v320_v44  ;;  %v335_v12 = vrot.slane %v265_v40, 4 }
  0xc1   : > { %v280_v52 = vsel %vm277_vm4, %v278_v41, %v279_v46  ;;  %v290_v53 = vadd.f32 %v279_v46, %v267_v45  ;;  %v312_v57 = vadd.f32 %v306_v55, %v289_v51  ;;  %v303_v60 = vsel %vm300_vm5, %v301_v48, %v302_v47 }
  0xc2   : > { %v288_v58 = vadd.f32 %v280_v52, %v265_v40  ;;  %v329_v59 = vadd.f32 %v320_v44, %v314_v49  ;;  %v340_v17 = vsel %vm334_vm7, %v338_v36, %v339_v50  ;;  %v318_v18 = vsel %vm315_vm6, %v316_v56, %v317_v54 }
  0xc3   : > { %v313_v61 = vadd.f32 %v302_v47, %v290_v53  ;;  %v327_v3 = vadd.f32 %v321_v63, %v312_v57  ;;  %v337_v22 = vsel %vm334_vm7, %v335_v12, %v336_v62 }
  0xc4   : > { %v311_v7 = vadd.f32 %v303_v60, %v288_v58  ;;  %v348_v11 = vadd.f32 %v339_v50, %v329_v59 }
  0xc5   : > { %v328_v16 = vadd.f32 %v317_v54, %v313_v61  ;;  %v346_v19 = vadd.f32 %v340_v17, %v327_v3 }
  0xc6   : > { %v326_v20 = vadd.f32 %v318_v18, %v311_v7  ;;  %v352_v21 = vadd.f32 0.0001, %v348_v11 }
  0xc7   : > { %v347_v23 = vadd.f32 %v336_v62, %v328_v16  ;;  %v350_v24 = vadd.f32 0.0001, %v346_v19 }
  0xc8   : > { %v345_v25 = vadd.f32 %v337_v22, %v326_v20  ;;  %2114 = vrcp.f32 %v352_v21 }
  0xc9   : > { %v351_v26 = vadd.f32 0.0001, %v347_v23  ;;  %2116 = vrcp.f32 %v350_v24 }
  0xca   : > { %v349_v27 = vadd.f32 0.0001, %v345_v25 }
  0xcb   : > { %2118 = vrcp.f32 %v351_v26 }
  0xcc   : > { %2120 = vrcp.f32 %v349_v27 }
  0xd2   : > { %v2115_v28 = vpop.eup %2114 }
  0xd3   : > { %v2117_v29 = vpop.eup %2116  ;;  %v366_v33 = vrot.slane %v2115_v28, 6 }
  0xd4   : > { %v363_v31 = vrot.slane %v2117_v29, 6 }
  0xd5   : > { %v2119_v30 = vpop.eup %2118 }
  0xd6   : > { %v2121_v32 = vpop.eup %2120  ;;  %370 = vrot.lane.b32.xlu1 %v363_v31, %s2222_s21  ;;  %v364_v35 = vrot.slane %v2119_v30, 6  ;;  %v367_v36 = vsel %vm361_vm8, %v363_v31, %v366_v33 }
  0xd7   : > { %v362_v34 = vrot.slane %v2121_v32, 6 }
  0xd9   : > { %368 = vrot.lane.b32.xlu0 %v362_v34, %s2222_s21  ;;  %v365_v37 = vsel %vm361_vm8, %v362_v34, %v364_v35 }
  0xda   : > { %374 = vrot.lane.b32.xlu1 %v367_v36, %s2222_s21 }
  0xdd   : > { %372 = vrot.lane.b32.xlu0 %v365_v37, %s2222_s21 }
 0x148   : > { %v371_v38 = vpop.permute.xlu1 %370 }
 0x14b   : > { %v369_v39 = vpop.permute.xlu0 %368 }
 0x14c   : > { %v377_v40 = vsel %vm376_vm9, %v369_v39, %v371_v38  ;;  %v383_v41 = vmul.f32 %v369_v39, %v2322_v4  ;;  %v391_v42 = vmul.f32 %v2324_v5, %v369_v39  ;;  %v375_v45 = vpop.permute.xlu1 %374  ;;  %v399_v48 = vmul.f32 %v2326_v6, %v369_v39 }
 0x14d   : > { %v384_v43 = vmul.f32 %v377_v40, %v2339_v13  ;;  %v392_v44 = vmul.f32 %v2341_v14, %v377_v40  ;;  %v400_v49 = vmul.f32 %v2343_v15, %v377_v40 }
 0x14e   : > { %v2386_v46 = vadd.f32 -1.0, %v383_v41  ;;  %v2392_v51 = vadd.f32 -1.0, %v391_v42  ;;  %v2404_v6 = vadd.f32 -1.0, %v399_v48 }
 0x14f   : > { %v2388_v47 = vadd.f32 -1.0, %v384_v43  ;;  %v373_v50 = vpop.permute.xlu0 %372  ;;  %v2398_v13 = vadd.f32 -1.0, %v392_v44  ;;  %v2406_v15 = vadd.f32 -1.0, %v400_v49 }
 0x150   : > { %v378_v52 = vsel %vm376_vm9, %v373_v50, %v375_v45  ;;  %v385_v4 = vmul.f32 %v373_v50, %v2314_v0  ;;  %v393_v5 = vmul.f32 %v2316_v1, %v373_v50  ;;  %441 = vrot.lane.b32.xlu0 %v2386_v46, %s2219_s14  ;;  %v401_v1 = vmul.f32 %v2318_v2, %v373_v50 }
 0x151   : > { %v386_v14 = vmul.f32 %v378_v52, %v2330_v8  ;;  %v394_v53 = vmul.f32 %v2332_v9, %v378_v52  ;;  %443 = vrot.lane.b32.xlu1 %v2388_v47, %s2219_s14  ;;  %v1529_v8 = vadd.f32 %v2392_v51, %v2386_v46  ;;  %v402_v56 = vmul.f32 %v2334_v10, %v378_v52 }
 0x152   : > { %v2408_v54 = vadd.f32 -1.0, %v385_v4  ;;  %v2410_v0 = vadd.f32 -1.0, %v393_v5  ;;  %v1530_v57 = vadd.f32 %v2398_v13, %v2388_v47  ;;  %v2432_v59 = vadd.f32 -1.0, %v401_v1 }
 0x153   : > { %v2417_v9 = vadd.f32 -1.0, %v386_v14  ;;  %v2419_v55 = vadd.f32 -1.0, %v394_v53  ;;  %v2427_v2 = vadd.f32 %v2404_v6, %v1529_v8  ;;  %v2438_v60 = vadd.f32 -1.0, %v402_v56 }
 0x154   : > { %609 = vrot.lane.b32.xlu0 %v2392_v51, %s2219_s14  ;;  %v2430_v58 = vadd.f32 %v2406_v15, %v1530_v57  ;;  %v1531_v10 = vadd.f32 %v2410_v0, %v2408_v54  ;;  %v411_v3 = vmul.f32 0.01831564, %v2386_v46  ;;  %v412_v7 = vmul.f32 0.01831564, %v2388_v47 }
 0x155   : > { %611 = vrot.lane.b32.xlu1 %v2398_v13, %s2219_s14  ;;  %v1532_v61 = vadd.f32 %v2419_v55, %v2417_v9  ;;  %v2469_v11 = vmul.f32 1.12535176e-07, %v2386_v46  ;;  %v2472_v12 = vmul.f32 1.12535176e-07, %v2388_v47  ;;  %v579_v16 = vmul.f32 0.01831564, %v2392_v51 }
 0x156   : > { %v2445_v62 = vadd.f32 %v2432_v59, %v1531_v10  ;;  %v580_v17 = vmul.f32 0.01831564, %v2398_v13  ;;  %v2485_v18 = vmul.f32 1.12535176e-07, %v2392_v51  ;;  %v2488_v19 = vmul.f32 1.12535176e-07, %v2398_v13 }
 0x157   : > { %v2448_v63 = vadd.f32 %v2438_v60, %v1532_v61  ;;  %v747_v20 = vmul.f32 0.01831564, %v2404_v6  ;;  %v748_v21 = vmul.f32 0.01831564, %v2406_v15  ;;  %v2501_v22 = vmul.f32 1.12535176e-07, %v2404_v6 }
 0x158   : > { %777 = vrot.lane.b32.xlu0 %v2404_v6, %s2219_s14  ;;  %v2504_v23 = vmul.f32 1.12535176e-07, %v2406_v15  ;;  %v915_v24 = vmul.f32 0.6411804, %v2386_v46  ;;  %v916_v25 = vmul.f32 0.6411804, %v2388_v47 }
 0x159   : > { %779 = vrot.lane.b32.xlu1 %v2406_v15, %s2219_s14  ;;  %v1065_v26 = vmul.f32 0.6411804, %v2392_v51  ;;  %v1066_v27 = vmul.f32 0.6411804, %v2398_v13  ;;  %v2521_v28 = vmul.f32 0.16901332, %v2386_v46 }
 0x15a   : > { %v2524_v29 = vmul.f32 0.16901332, %v2388_v47  ;;  %v1215_v30 = vmul.f32 0.6411804, %v2404_v6  ;;  %v1216_v31 = vmul.f32 0.6411804, %v2406_v15 }
 0x15b   : > { %v2537_v32 = vmul.f32 0.16901332, %v2392_v51  ;;  %v2540_v33 = vmul.f32 0.16901332, %v2398_v13  ;;  %v2549_v34 = vmul.f32 0.16901332, %v2404_v6 }
 0x15c   : > { %445 = vrot.lane.b32.xlu0 %v2408_v54, %s2219_s14  ;;  %v2552_v35 = vmul.f32 0.16901332, %v2406_v15  ;;  %v413_v36 = vmul.f32 0.01831564, %v2408_v54  ;;  %v414_v37 = vmul.f32 0.01831564, %v2417_v9 }
 0x15d   : > { %447 = vrot.lane.b32.xlu1 %v2417_v9, %s2219_s14  ;;  %v2565_v38 = vmul.f32 1.12535176e-07, %v2408_v54  ;;  %v2568_v39 = vmul.f32 1.12535176e-07, %v2417_v9  ;;  %v581_v40 = vmul.f32 0.01831564, %v2410_v0 }
 0x15e   : > { %v582_v41 = vmul.f32 0.01831564, %v2419_v55  ;;  %v2583_v43 = vmul.f32 1.12535176e-07, %v2410_v0  ;;  %v2588_v45 = vmul.f32 1.12535176e-07, %v2419_v55 }
 0x15f   : > { %v749_v47 = vmul.f32 0.01831564, %v2432_v59  ;;  %v750_v49 = vmul.f32 0.01831564, %v2438_v60  ;;  %v2611_v4 = vmul.f32 1.12535176e-07, %v2432_v59 }
 0x160   : > { %613 = vrot.lane.b32.xlu0 %v2410_v0, %s2219_s14  ;;  %3862 = vst [vmem:[#allocation5_spill] sm:$0xff] %v2583_v43  ;;  %3863 = vst [vmem:[#allocation6_spill] sm:$0xff] %v2588_v45  ;;  %v2616_v13 = vmul.f32 1.12535176e-07, %v2438_v60  ;;  %v917_v53 = vmul.f32 0.6411804, %v2408_v54 }
 0x161   : > { %615 = vrot.lane.b32.xlu1 %v2419_v55, %s2219_s14  ;;  %3864 = vst [vmem:[#allocation7_spill] sm:$0xff] %v2611_v4  ;;  %v918_v15 = vmul.f32 0.6411804, %v2417_v9  ;;  %v1067_v57 = vmul.f32 0.6411804, %v2410_v0 }
 0x162   : > { %3865 = vst [vmem:[#allocation8_spill] sm:$0xff] %v2616_v13  ;;  %v1068_v61 = vmul.f32 0.6411804, %v2419_v55 }
 0x164   : > { %781 = vrot.lane.b32.xlu0 %v2432_v59, %s2219_s14 }
 0x165   : > { %783 = vrot.lane.b32.xlu1 %v2438_v60, %s2219_s14 }
 0x168   : > { %419 = vrot.lane.b32.xlu0 %v411_v3, %s2218_s5 }
 0x169   : > { %421 = vrot.lane.b32.xlu1 %v412_v7, %s2218_s5 }
 0x16c   : > { %459 = vrot.lane.b32.xlu0 %v411_v3, %s2220_s15 }
 0x16d   : > { %461 = vrot.lane.b32.xlu1 %v412_v7, %s2220_s15  ;;  %v2647_v7 = vmul.f32 0.16901332, %v2408_v54 }
 0x16f   : > { %3866 = vst [vmem:[#allocation9_spill] sm:$0xff] %v2647_v7 }
 0x170   : > { %481 = vrot.lane.b32.xlu0 %v2469_v11, %s2221_s18 }
 0x171   : > { %483 = vrot.lane.b32.xlu1 %v2472_v12, %s2221_s18 }
 0x174   : > { %587 = vrot.lane.b32.xlu0 %v579_v16, %s2218_s5 }
 0x175   : > { %589 = vrot.lane.b32.xlu1 %v580_v17, %s2218_s5 }
 0x178   : > { %627 = vrot.lane.b32.xlu0 %v579_v16, %s2220_s15 }
 0x179   : > { %629 = vrot.lane.b32.xlu1 %v580_v17, %s2220_s15  ;;  %v2652_v17 = vmul.f32 0.16901332, %v2417_v9 }
 0x17b   : > { %3867 = vst [vmem:[#allocation10_spill] sm:$0xff] %v2652_v17 }
 0x17c   : > { %649 = vrot.lane.b32.xlu0 %v2485_v18, %s2221_s18 }
 0x17d   : > { %651 = vrot.lane.b32.xlu1 %v2488_v19, %s2221_s18 }
 0x180   : > { %755 = vrot.lane.b32.xlu0 %v747_v20, %s2218_s5 }
 0x181   : > { %757 = vrot.lane.b32.xlu1 %v748_v21, %s2218_s5 }
 0x184   : > { %795 = vrot.lane.b32.xlu0 %v747_v20, %s2220_s15 }
 0x185   : > { %797 = vrot.lane.b32.xlu1 %v748_v21, %s2220_s15 }
 0x188   : > { %817 = vrot.lane.b32.xlu0 %v2501_v22, %s2221_s18 }
 0x189   : > { %819 = vrot.lane.b32.xlu1 %v2504_v23, %s2221_s18 }
 0x18c   : > { %923 = vrot.lane.b32.xlu0 %v915_v24, %s2218_s5 }
 0x18d   : > { %925 = vrot.lane.b32.xlu1 %v916_v25, %s2218_s5 }
 0x190   : > { %945 = vrot.lane.b32.xlu0 %v915_v24, %s2220_s15  ;;  %v1217_v24 = vmul.f32 0.6411804, %v2432_v59 }
 0x191   : > { %947 = vrot.lane.b32.xlu1 %v916_v25, %s2220_s15  ;;  %v1218_v25 = vmul.f32 0.6411804, %v2438_v60 }
 0x194   : > { %1073 = vrot.lane.b32.xlu0 %v1065_v26, %s2218_s5 }
 0x195   : > { %1075 = vrot.lane.b32.xlu1 %v1066_v27, %s2218_s5 }
 0x198   : > { %967 = vrot.lane.b32.xlu0 %v2521_v28, %s2221_s18 }
 0x199   : > { %969 = vrot.lane.b32.xlu1 %v2524_v29, %s2221_s18 }
 0x19c   : > { %1095 = vrot.lane.b32.xlu0 %v1065_v26, %s2220_s15 }
 0x19d   : > { %1097 = vrot.lane.b32.xlu1 %v1066_v27, %s2220_s15  ;;  %v2675_v27 = vmul.f32 0.16901332, %v2410_v0 }
 0x19f   : > { %3868 = vst [vmem:[#allocation11_spill] sm:$0xff] %v2675_v27 }
 0x1a0   : > { %1223 = vrot.lane.b32.xlu0 %v1215_v30, %s2218_s5 }
 0x1a1   : > { %1225 = vrot.lane.b32.xlu1 %v1216_v31, %s2218_s5 }
 0x1a4   : > { %1117 = vrot.lane.b32.xlu0 %v2537_v32, %s2221_s18 }
 0x1a5   : > { %1119 = vrot.lane.b32.xlu1 %v2540_v33, %s2221_s18 }
 0x1a8   : > { %1245 = vrot.lane.b32.xlu0 %v1215_v30, %s2220_s15 }
 0x1a9   : > { %1247 = vrot.lane.b32.xlu1 %v1216_v31, %s2220_s15  ;;  %v2680_v31 = vmul.f32 0.16901332, %v2419_v55 }
 0x1ab   : > { %3869 = vst [vmem:[#allocation12_spill] sm:$0xff] %v2680_v31 }
 0x1ac   : > { %1267 = vrot.lane.b32.xlu0 %v2549_v34, %s2221_s18 }
 0x1ad   : > { %1269 = vrot.lane.b32.xlu1 %v2552_v35, %s2221_s18 }
 0x1b0   : > { %423 = vrot.lane.b32.xlu0 %v413_v36, %s2218_s5 }
 0x1b1   : > { %425 = vrot.lane.b32.xlu1 %v414_v37, %s2218_s5 }
 0x1b4   : > { %463 = vrot.lane.b32.xlu0 %v413_v36, %s2220_s15 }
 0x1b5   : > { %465 = vrot.lane.b32.xlu1 %v414_v37, %s2220_s15 }
 0x1b8   : > { %485 = vrot.lane.b32.xlu0 %v2565_v38, %s2221_s18 }
 0x1b9   : > { %487 = vrot.lane.b32.xlu1 %v2568_v39, %s2221_s18 }
 0x1bc   : > { %591 = vrot.lane.b32.xlu0 %v581_v40, %s2218_s5 }
 0x1bd   : > { %593 = vrot.lane.b32.xlu1 %v582_v41, %s2218_s5 }
 0x1c0   : > { %631 = vrot.lane.b32.xlu0 %v581_v40, %s2220_s15  ;;  %v2695_v40 = vmul.f32 0.16901332, %v2432_v59  ;;  %v1538_v59 = vmul.f32 0.33333334, %v2430_v58 }
 0x1c1   : > { %633 = vrot.lane.b32.xlu1 %v582_v41, %s2220_s15  ;;  %v2700_v41 = vmul.f32 0.16901332, %v2438_v60 }
 0x1c2   : > { %v2580_v42 = vpop.permute.xlu0 %441  ;;  %3870 = vst [vmem:[#allocation13_spill] sm:$0xff] %v2695_v40 }
 0x1c3   : > { %v2585_v44 = vpop.permute.xlu1 %443  ;;  %3871 = vst [vmem:[#allocation14_spill] sm:$0xff] %v2700_v41 }
 0x1c4   : > { %653 = vrot.lane.b32.xlu0 %v2583_v43, %s2221_s18 }
 0x1c5   : > { %655 = vrot.lane.b32.xlu1 %v2588_v45, %s2221_s18 }
 0x1c6   : > { %v2594_v46 = vpop.permute.xlu0 %609 }
 0x1c7   : > { %v2597_v48 = vpop.permute.xlu1 %611 }
 0x1c8   : > { %759 = vrot.lane.b32.xlu0 %v749_v47, %s2218_s5 }
 0x1c9   : > { %761 = vrot.lane.b32.xlu1 %v750_v49, %s2218_s5 }
 0x1ca   : > { %v2602_v50 = vpop.permute.xlu0 %777 }
 0x1cb   : > { %v2604_v51 = vpop.permute.xlu1 %779 }
 0x1cc   : > { %799 = vrot.lane.b32.xlu0 %v749_v47, %s2220_s15 }
 0x1cd   : > { %801 = vrot.lane.b32.xlu1 %v750_v49, %s2220_s15  ;;  %v1537_v49 = vmul.f32 0.33333334, %v2427_v2 }
 0x1ce   : > { %v2608_v52 = vpop.permute.xlu0 %445 }
 0x1cf   : > { %v2613_v5 = vpop.permute.xlu1 %447  ;;  %v1545_v58 = vmul.f32 0.062176526, %v1537_v49 }
 0x1d0   : > { %821 = vrot.lane.b32.xlu0 %v2611_v4, %s2221_s18  ;;  %v1714_v4 = vmul.f32 0.73444366, %v1538_v59 }
 0x1d1   : > { %823 = vrot.lane.b32.xlu1 %v2616_v13, %s2221_s18 }
 0x1d2   : > { %v2622_v14 = vpop.permute.xlu0 %613 }
 0x1d3   : > { %v2625_v6 = vpop.permute.xlu1 %615 }
 0x1d4   : > { %927 = vrot.lane.b32.xlu0 %v917_v53, %s2218_s5 }
 0x1d5   : > { %929 = vrot.lane.b32.xlu1 %v918_v15, %s2218_s5 }
 0x1d6   : > { %v2630_v1 = vpop.permute.xlu0 %781 }
 0x1d7   : > { %v2632_v8 = vpop.permute.xlu1 %783 }
 0x1d8   : > { %949 = vrot.lane.b32.xlu0 %v917_v53, %s2220_s15 }
 0x1d9   : > { %951 = vrot.lane.b32.xlu1 %v918_v15, %s2220_s15  ;;  %v2717_v15 = vmul.f32 0.33333334, %v2445_v62 }
 0x1da   : > { %v2636_v56 = vpop.permute.xlu0 %419 }
 0x1db   : > { %v2639_v10 = vpop.permute.xlu1 %421 }
 0x1dc   : > { %1077 = vrot.lane.b32.xlu0 %v1067_v57, %s2218_s5 }
 0x1dd   : > { %1079 = vrot.lane.b32.xlu1 %v1068_v61, %s2218_s5 }
 0x1de   : > { %v2644_v3 = vpop.permute.xlu0 %459 }
 0x1df   : > { %v2649_v16 = vpop.permute.xlu1 %461 }
 0x1e0   : > { %971 = vrot.lane.b32.xlu0 %v2647_v7, %s2221_s18 }
 0x1e1   : > { %973 = vrot.lane.b32.xlu1 %v2652_v17, %s2221_s18 }
 0x1e2   : > { %v2658_v20 = vpop.permute.xlu0 %481 }
 0x1e3   : > { %v2660_v21 = vpop.permute.xlu1 %483 }
 0x1e4   : > { %1099 = vrot.lane.b32.xlu0 %v1067_v57, %s2220_s15 }
 0x1e5   : > { %1101 = vrot.lane.b32.xlu1 %v1068_v61, %s2220_s15  ;;  %v2722_v61 = vmul.f32 0.33333334, %v2448_v63  ;;  %v449_v63 = vsel %vm212_vm1, %v2580_v42, %v2585_v44 }
 0x1e6   : > { %v2664_v54 = vpop.permute.xlu0 %587 }
 0x1e7   : > { %v2667_v9 = vpop.permute.xlu1 %589 }
 0x1e8   : > { %1227 = vrot.lane.b32.xlu0 %v1217_v24, %s2218_s5 }
 0x1e9   : > { %1229 = vrot.lane.b32.xlu1 %v1218_v25, %s2218_s5 }
 0x1ea   : > { %v2672_v26 = vpop.permute.xlu0 %627 }
 0x1eb   : > { %v2677_v30 = vpop.permute.xlu1 %629 }
 0x1ec   : > { %1121 = vrot.lane.b32.xlu0 %v2675_v27, %s2221_s18 }
 0x1ed   : > { %1123 = vrot.lane.b32.xlu1 %v2680_v31, %s2221_s18  ;;  %v1713_v31 = vmul.f32 0.73444366, %v1537_v49 }
 0x1ee   : > { %v2686_v36 = vpop.permute.xlu0 %649 }
 0x1ef   : > { %v2688_v37 = vpop.permute.xlu1 %651 }
 0x1f0   : > { %1249 = vrot.lane.b32.xlu0 %v1217_v24, %s2220_s15 }
 0x1f1   : > { %1251 = vrot.lane.b32.xlu1 %v1218_v25, %s2220_s15  ;;  %v1546_v25 = vmul.f32 0.062176526, %v1538_v59 }
 0x1f2   : > { %v2692_v0 = vpop.permute.xlu0 %755 }
 0x1f3   : > { %v2697_v55 = vpop.permute.xlu1 %757 }
 0x1f4   : > { %1271 = vrot.lane.b32.xlu0 %v2695_v40, %s2221_s18 }
 0x1f5   : > { %1273 = vrot.lane.b32.xlu1 %v2700_v41, %s2221_s18 }
 0x1f6   : > { %v2706_v47 = vpop.permute.xlu0 %795 }
 0x1f7   : > { %v2709_v53 = vpop.permute.xlu1 %797 }
 0x1f8   : > { %1575 = vrot.lane.b32.xlu0 %v1537_v49, %s2219_s14 }
 0x1f9   : > { %1577 = vrot.lane.b32.xlu1 %v1538_v59, %s2219_s14 }
 0x1fa   : > { %v2714_v60 = vpop.permute.xlu0 %817 }
 0x1fb   : > { %v2719_v57 = vpop.permute.xlu1 %819 }
 0x1fc   : > { %1579 = vrot.lane.b32.xlu0 %v2717_v15, %s2219_s14 }
 0x1fd   : > { %1581 = vrot.lane.b32.xlu1 %v2722_v61, %s2219_s14 }
 0x1fe   : > { %v924_v2 = vpop.permute.xlu0 %923 }
 0x1ff   : > { %v926_v24 = vpop.permute.xlu1 %925 }
 0x200   : > { %v931_v40 = vsel %vm185_vm0, %v924_v2, %v926_v24  ;;  %1553 = vrot.lane.b32.xlu0 %v1545_v58, %s2218_s5  ;;  %v938_v41 = vadd.f32 %v926_v24, %v2524_v29 }
 0x201   : > { %v937_v62 = vadd.f32 %v931_v40, %v2521_v28  ;;  %1555 = vrot.lane.b32.xlu1 %v1546_v25, %s2218_s5 }
 0x202   : > { %v946_v27 = vpop.permute.xlu0 %945  ;;  %v942_v13 = vadd.f32 %v938_v41, %v2585_v44  ;;  %v427_v41 = vsel %vm185_vm0, %v2636_v56, %v2639_v10 }
 0x203   : > { %v948_v17 = vpop.permute.xlu1 %947  ;;  %v941_v7 = vadd.f32 %v937_v62, %v449_v63  ;;  %v2765_v62 = vmul.f32 0.29096046, %v1537_v49 }
 0x204   : > { %v953_v2 = vsel %vm231_vm2, %v946_v27, %v948_v17  ;;  %1721 = vrot.lane.b32.xlu0 %v1713_v31, %s2218_s5  ;;  %v960_v40 = vadd.f32 %v948_v17, %v942_v13 }
 0x205   : > { %v959_v28 = vadd.f32 %v953_v2, %v941_v7  ;;  %1723 = vrot.lane.b32.xlu1 %v1714_v4, %s2218_s5  ;;  %v434_v7 = vadd.f32 %v2639_v10, %v2472_v12  ;;  %v2762_v12 = vmul.f32 1.4945338e-05, %v1538_v59  ;;  %3874 = vst [vmem:[#allocation17_spill] sm:$0xff] %v2765_v62 }
 0x206   : > { %v1074_v45 = vpop.permute.xlu0 %1073 }
 0x207   : > { %v1076_v43 = vpop.permute.xlu1 %1075  ;;  %3873 = vst [vmem:[#allocation16_spill] sm:$0xff] %v2762_v12  ;;  %v456_v2 = vadd.f32 %v2585_v44, %v434_v7  ;;  %v2782_v44 = vmul.f32 0.062176526, %v2717_v15  ;;  %v2801_v7 = vmul.f32 0.29096046, %v2717_v15 }
 0x208   : > { %v1081_v42 = vsel %vm185_vm0, %v1074_v45, %v1076_v43  ;;  %1593 = vrot.lane.b32.xlu0 %v1545_v58, %s2220_s15  ;;  %v1088_v13 = vadd.f32 %v1076_v43, %v2540_v33  ;;  %v433_v33 = vadd.f32 %v427_v41, %v2469_v11  ;;  %v602_v11 = vadd.f32 %v2667_v9, %v2488_v19 }
 0x209   : > { %1595 = vrot.lane.b32.xlu1 %v1546_v25, %s2220_s15  ;;  %v1087_v27 = vadd.f32 %v1081_v42, %v2537_v32  ;;  %v617_v32 = vsel %vm212_vm1, %v2594_v46, %v2597_v48  ;;  %v2760_v25 = vmul.f32 1.4945338e-05, %v1537_v49  ;;  %v2788_v42 = vmul.f32 0.73444366, %v2717_v15  ;;  %3878 = vst [vmem:[#allocation21_spill] sm:$0xff] %v2801_v7 }
 0x20a   : > { %v968_v29 = vpop.permute.xlu0 %967  ;;  %v1092_v46 = vadd.f32 %v1088_v13, %v2597_v48  ;;  %v2794_v19 = vmul.f32 1.4945338e-05, %v2717_v15  ;;  %v467_v13 = vsel %vm231_vm2, %v2644_v3, %v2649_v16  ;;  %v624_v15 = vadd.f32 %v2597_v48, %v602_v11 }
 0x20b   : > { %v970_v24 = vpop.permute.xlu1 %969  ;;  %3872 = vst [vmem:[#allocation15_spill] sm:$0xff] %v2760_v25  ;;  %v1091_v10 = vadd.f32 %v1087_v27, %v617_v32  ;;  %v770_v3 = vadd.f32 %v2697_v55, %v2504_v23  ;;  %v2833_v48 = vsel %vm212_vm1, %v2608_v52, %v2613_v5  ;;  %v2838_v23 = vsel %vm212_vm1, %v2622_v14, %v2625_v6 }
 0x20c   : > { %v975_v17 = vsel %vm254_vm3, %v968_v29, %v970_v24  ;;  %v2751_v45 = vadd.f32 %v970_v24, %v960_v40  ;;  %1743 = vrot.lane.b32.xlu0 %v1713_v31, %s2220_s15  ;;  %v2767_v31 = vmul.f32 0.29096046, %v1538_v59  ;;  %v2785_v59 = vmul.f32 0.062176526, %v2722_v61  ;;  %3876 = vst [vmem:[#allocation19_spill] sm:$0xff] %v2794_v19 }
 0x20d   : > { %v2754_v58 = vadd.f32 %v975_v17, %v959_v28  ;;  %1745 = vrot.lane.b32.xlu1 %v1714_v4, %s2220_s15  ;;  %v595_v4 = vsel %vm185_vm0, %v2664_v54, %v2667_v9  ;;  %v2791_v29 = vmul.f32 0.73444366, %v2722_v61  ;;  %v455_v9 = vadd.f32 %v449_v63, %v433_v33 }
 0x20e   : > { %v1096_v56 = vpop.permute.xlu0 %1095  ;;  %3875 = vst [vmem:[#allocation18_spill] sm:$0xff] %v2767_v31  ;;  %v601_v41 = vadd.f32 %v595_v4, %v2485_v18  ;;  %v2798_v24 = vmul.f32 1.4945338e-05, %v2722_v61  ;;  %v474_v17 = vadd.f32 %v2649_v16, %v456_v2  ;;  %v785_v18 = vsel %vm212_vm1, %v2602_v50, %v2604_v51 }
 0x20f   : > { %v1098_v43 = vpop.permute.xlu1 %1097  ;;  %v2822_v16 = vmul.f32 0.29096046, %v2722_v61  ;;  %v473_v50 = vadd.f32 %v467_v13, %v455_v9 }
 0x210   : > { %v1103_v28 = vsel %vm231_vm2, %v1096_v56, %v1098_v43  ;;  %1615 = vrot.lane.b32.xlu0 %v2760_v25, %s2221_s18  ;;  %v1110_v54 = vadd.f32 %v1098_v43, %v1092_v46  ;;  %3877 = vst [vmem:[#allocation20_spill] sm:$0xff] %v2798_v24  ;;  %v763_v56 = vsel %vm185_vm0, %v2692_v0, %v2697_v55 }
 0x211   : > { %v1109_v49 = vadd.f32 %v1103_v28, %v1091_v10  ;;  %1617 = vrot.lane.b32.xlu1 %v2762_v12, %s2221_s18  ;;  %3879 = vst [vmem:[#allocation22_spill] sm:$0xff] %v2822_v16  ;;  %v489_v0 = vsel %vm254_vm3, %v2658_v20, %v2660_v21  ;;  %v2828_v33 = vadd.f32 %v2660_v21, %v474_v17  ;;  %v3890_v12 = vld [vmem:[#allocation5_spill] sm:$0xff] }
 0x212   : > { %v1224_v40 = vpop.permute.xlu0 %1223  ;;  %v623_v55 = vadd.f32 %v617_v32, %v601_v41  ;;  %v769_v61 = vadd.f32 %v763_v56, %v2501_v22  ;;  %v635_v21 = vsel %vm231_vm2, %v2672_v26, %v2677_v30  ;;  %v2851_v14 = vadd.f32 %v489_v0, %v473_v50 }
 0x213   : > { %v1226_v27 = vpop.permute.xlu1 %1225  ;;  %v642_v22 = vadd.f32 %v2677_v30, %v624_v15  ;;  %v2863_v26 = vmul.f32 0.01831564, %v2828_v33  ;;  %v657_v46 = vsel %vm254_vm3, %v2686_v36, %v2688_v37  ;;  %v2871_v30 = vsel %vm212_vm1, %v2630_v1, %v2632_v8 }
 0x214   : > { %v1231_v63 = vsel %vm185_vm0, %v1224_v40, %v1226_v27  ;;  %1765 = vrot.lane.b32.xlu0 %v2765_v62, %s2221_s18  ;;  %v1238_v2 = vadd.f32 %v1226_v27, %v2552_v35  ;;  %v2860_v35 = vmul.f32 1.12535176e-07, %v2828_v33  ;;  %v641_v11 = vadd.f32 %v635_v21, %v623_v55 }
 0x215   : > { %1767 = vrot.lane.b32.xlu1 %v2767_v31, %s2221_s18  ;;  %v1237_v20 = vadd.f32 %v1231_v63, %v2549_v34  ;;  %v792_v34 = vadd.f32 %v2604_v51, %v770_v3  ;;  %v803_v27 = vsel %vm231_vm2, %v2706_v47, %v2709_v53  ;;  %v2885_v1 = vmul.f32 1.12535176e-07, %v2851_v14 }
 0x216   : > { %v1118_v43 = vpop.permute.xlu0 %1117  ;;  %v1242_v36 = vadd.f32 %v1238_v2, %v2604_v51  ;;  %v2893_v47 = vmul.f32 0.01831564, %v2851_v14  ;;  %v825_v63 = vsel %vm254_vm3, %v2714_v60, %v2719_v57  ;;  %v514_v3 = vrot.slane %v2863_v26, 1 }
 0x217   : > { %v1120_v10 = vpop.permute.xlu1 %1119  ;;  %v1241_v9 = vadd.f32 %v1237_v20, %v785_v18  ;;  %v810_v17 = vadd.f32 %v2709_v53, %v792_v34 }
 0x218   : > { %v1125_v52 = vsel %vm254_vm3, %v1118_v43, %v1120_v10  ;;  %v2847_v4 = vadd.f32 %v1120_v10, %v1110_v54  ;;  %1557 = vrot.lane.b32.xlu0 %v2782_v44, %s2218_s5  ;;  %v791_v54 = vadd.f32 %v785_v18, %v769_v61 }
 0x219   : > { %v2855_v32 = vadd.f32 %v1125_v52, %v1109_v49  ;;  %1559 = vrot.lane.b32.xlu1 %v2785_v59, %s2218_s5  ;;  %v2874_v49 = vadd.f32 %v2688_v37, %v642_v22  ;;  %v2887_v37 = vadd.f32 %v657_v46, %v641_v11  ;;  %v2904_v43 = vadd.f32 %v2719_v57, %v810_v17 }
 0x21a   : > { %3880 = vst [vmem:[#allocation23_spill] sm:$0xff] %v2847_v4  ;;  %v1246_v28 = vpop.permute.xlu0 %1245  ;;  %v809_v53 = vadd.f32 %v803_v27, %v791_v54  ;;  %v2976_v27 = vmul.f32 0.6411804, %v2754_v58  ;;  %v3889_v17 = vrot.slane %v2893_v47, 1 }
 0x21b   : > { %3881 = vst [vmem:[#allocation24_spill] sm:$0xff] %v2855_v32  ;;  %v1248_v40 = vpop.permute.xlu1 %1247  ;;  %v2901_v0 = vmul.f32 0.01831564, %v2874_v49  ;;  %v2908_v61 = vmul.f32 1.12535176e-07, %v2874_v49 }
 0x21c   : > { %v1253_v13 = vsel %vm231_vm2, %v1246_v28, %v1248_v40  ;;  %1725 = vrot.lane.b32.xlu0 %v2788_v42, %s2218_s5  ;;  %v1260_v18 = vadd.f32 %v1248_v40, %v1242_v36  ;;  %v2917_v21 = vmul.f32 0.01831564, %v2887_v37  ;;  %v2919_v57 = vadd.f32 %v825_v63, %v809_v53 }
 0x21d   : > { %v1259_v56 = vadd.f32 %v1253_v13, %v1241_v9  ;;  %1727 = vrot.lane.b32.xlu1 %v2791_v29, %s2218_s5  ;;  %v2935_v40 = vmul.f32 0.01831564, %v2904_v43  ;;  %v2940_v36 = vmul.f32 1.12535176e-07, %v2904_v43  ;;  %v2962_v9 = vmul.f32 0.6411804, %v2751_v45 }
 0x21e   : > { %v1268_v15 = vpop.permute.xlu0 %1267  ;;  %v2948_v63 = vmul.f32 0.01831564, %v2919_v57  ;;  %v2955_v53 = vmul.f32 1.12535176e-07, %v2919_v57  ;;  %v2992_v28 = vmul.f32 0.16901332, %v2847_v4 }
 0x21f   : > { %v1270_v50 = vpop.permute.xlu1 %1269  ;;  %s2126_s5 = sshll.u32 %s2223_s4, 4  ;;  %s2127_s5 = int_to_ptr.vmem [resolvable:$false] %s2126_s5 }
 0x220   : > { %v1275_v20 = vsel %vm254_vm3, %v1268_v15, %v1270_v50  ;;  %v2911_v60 = vadd.f32 %v1270_v50, %v1260_v18  ;;  %1597 = vrot.lane.b32.xlu0 %v2782_v44, %s2220_s15  ;;  %v2929_v44 = vmul.f32 1.12535176e-07, %v2887_v37  ;;  %3884 = vst [vmem:[#allocation27_spill] sm:$0xff] %v2992_v28  ;;  %p2129_p2 = scmp.lt.s32.totalorder %s3748_s28, %s2127_s5 }
 0x221   : > { %v2921_v2 = vadd.f32 %v1275_v20, %v1259_v56  ;;  %1599 = vrot.lane.b32.xlu1 %v2785_v59, %s2220_s15 }
 0x222   : > { %3882 = vst [vmem:[#allocation25_spill] sm:$0xff] %v2911_v60  ;;  %v424_v46 = vpop.permute.xlu0 %423  ;;  %v3023_v51 = vmul.f32 0.6411804, %v2911_v60  ;;  %v3030_v41 = vmul.f32 0.16901332, %v2911_v60 }
 0x223   : > { %3883 = vst [vmem:[#allocation26_spill] sm:$0xff] %v2921_v2  ;;  %v426_v59 = vpop.permute.xlu1 %425  ;;  %v3037_v55 = vmul.f32 0.16901332, %v2921_v2  ;;  %v3040_v52 = vmul.f32 0.6411804, %v2921_v2 }
 0x224   : > { %v428_v13 = vsel %vm185_vm0, %v424_v46, %v426_v59  ;;  %1747 = vrot.lane.b32.xlu0 %v2788_v42, %s2220_s15  ;;  %v436_v42 = vadd.f32 %v426_v59, %v2568_v39  ;;  %v2973_v59 = vmul.f32 0.16901332, %v2751_v45  ;;  %3886 = vst [vmem:[#allocation29_spill] sm:$0xff] %v3030_v41 }
 0x225   : > { %v435_v18 = vadd.f32 %v428_v13, %v2565_v38  ;;  %1749 = vrot.lane.b32.xlu1 %v2791_v29, %s2220_s15  ;;  %3887 = vst [vmem:[#allocation30_spill] sm:$0xff] %v3037_v55  ;;  %3888 = vst [vmem:[#allocation31_spill] sm:$0xff] %v3040_v52 }
 0x226   : > { %v464_v20 = vpop.permute.xlu0 %463  ;;  %v458_v56 = vadd.f32 %v2613_v5, %v436_v42  ;;  %v2995_v42 = vmul.f32 0.6411804, %v2855_v32 }
 0x227   : > { %v466_v38 = vpop.permute.xlu1 %465  ;;  %v457_v29 = vadd.f32 %v2833_v48, %v435_v18 }
 0x228   : > { %v468_v50 = vsel %vm231_vm2, %v464_v20, %v466_v38  ;;  %1619 = vrot.lane.b32.xlu0 %v2794_v19, %s2221_s18  ;;  %v2983_v20 = vmul.f32 0.16901332, %v2754_v58  ;;  %v476_v13 = vadd.f32 %v466_v38, %v458_v56 }
 0x229   : > { %v475_v18 = vadd.f32 %v468_v50, %v457_v29  ;;  %1621 = vrot.lane.b32.xlu1 %v2798_v24, %s2221_s18  ;;  %v2989_v50 = vmul.f32 0.6411804, %v2847_v4  ;;  %v3891_v4 = vld [vmem:[#allocation6_spill] sm:$0xff] }
 0x22a   : > { %v486_v46 = vpop.permute.xlu0 %485 }
 0x22b   : > { %v488_v29 = vpop.permute.xlu1 %487 }
 0x22c   : > { %v490_v15 = vsel %vm254_vm3, %v486_v46, %v488_v29  ;;  %v498_v56 = vadd.f32 %v488_v29, %v476_v13  ;;  %1769 = vrot.lane.b32.xlu0 %v2801_v7, %s2221_s18  ;;  %v3008_v46 = vmul.f32 0.16901332, %v2855_v32 }
 0x22d   : > { %v497_v54 = vadd.f32 %v490_v15, %v475_v18  ;;  %1771 = vrot.lane.b32.xlu1 %v2822_v16, %s2221_s18 }
 0x22e   : > { %3885 = vst [vmem:[#allocation28_spill] sm:$0xff] %v3008_v46  ;;  %v3010_v13 = vmul.f32 0.01831564, %v498_v56  ;;  %v592_v29 = vpop.permute.xlu0 %591  ;;  %v3025_v38 = vmul.f32 1.12535176e-07, %v498_v56  ;;  %v533_v31 = vrot.slane %v498_v56, 2 }
 0x22f   : > { %v3015_v15 = vmul.f32 0.01831564, %v497_v54  ;;  %v594_v18 = vpop.permute.xlu1 %593  ;;  %v3044_v19 = vmul.f32 1.12535176e-07, %v497_v54  ;;  %v530_v28 = vrot.slane %v497_v54, 2 }
 0x230   : > { %v515_v10 = vrot.slane %v3010_v13, 1  ;;  %v604_v7 = vadd.f32 %v594_v18, %v3891_v4  ;;  %v3892_v4 = vrot.slane %v2828_v33, 2 }
 0x231   : > { %v512_v11 = vrot.slane %v3015_v15, 1  ;;  %v562_v33 = vrot.slane %v3044_v19, 4 }
 0x232   : > { %v516_v34 = vsel %vm277_vm4, %v514_v3, %v515_v10  ;;  %v632_v22 = vpop.permute.xlu0 %631  ;;  %v524_v39 = vadd.f32 %v515_v10, %v3025_v38  ;;  %v596_v3 = vsel %vm185_vm0, %v592_v29, %v594_v18  ;;  %v626_v29 = vadd.f32 %v2625_v6, %v604_v7 }
 0x233   : > { %v634_v16 = vpop.permute.xlu1 %633  ;;  %v513_v24 = vsel %vm277_vm4, %v3889_v17, %v512_v11  ;;  %v522_v25 = vadd.f32 %v516_v34, %v2860_v35  ;;  %v603_v60 = vadd.f32 %v596_v3, %v3890_v12  ;;  %v523_v2 = vadd.f32 %v512_v11, %v3044_v19 }
 0x234   : > { %v636_v32 = vsel %vm231_vm2, %v632_v22, %v634_v16  ;;  %v521_v17 = vadd.f32 %v513_v24, %v2885_v1  ;;  %v542_v56 = vadd.f32 %v533_v31, %v524_v39  ;;  %v534_v18 = vsel %vm300_vm5, %v3892_v4, %v533_v31 }
 0x235   : > { %v625_v62 = vadd.f32 %v2838_v23, %v603_v60  ;;  %v547_v11 = vrot.slane %v3010_v13, 3  ;;  %v540_v22 = vadd.f32 %v534_v18, %v522_v25  ;;  %v565_v3 = vrot.slane %v3025_v38, 4 }
 0x236   : > { %v654_v46 = vpop.permute.xlu0 %653  ;;  %v644_v39 = vadd.f32 %v634_v16, %v626_v29  ;;  %v3893_v7 = vrot.slane %v2851_v14, 2  ;;  %v541_v10 = vadd.f32 %v530_v28, %v523_v2  ;;  %v544_v12 = vrot.slane %v3015_v15, 3  ;;  %v3896_v29 = vld [vmem:[#allocation8_spill] sm:$0xff] }
 0x237   : > { %v656_v34 = vpop.permute.xlu1 %655  ;;  %v643_v24 = vadd.f32 %v636_v32, %v625_v62  ;;  %v556_v25 = vadd.f32 %v547_v11, %v542_v56  ;;  %v3894_v16 = vrot.slane %v2863_v26, 3  ;;  %v3895_v38 = vrot.slane %v2860_v35, 4 }
 0x238   : > { %v658_v54 = vsel %vm254_vm3, %v654_v46, %v656_v34  ;;  %v531_v60 = vsel %vm300_vm5, %v3893_v7, %v530_v28  ;;  %v666_v2 = vadd.f32 %v656_v34, %v644_v39  ;;  %v555_v7 = vadd.f32 %v544_v12, %v541_v10 }
 0x239   : > { %v539_v46 = vadd.f32 %v531_v60, %v521_v17  ;;  %v548_v14 = vsel %vm315_vm6, %v3894_v16, %v547_v11  ;;  %v665_v32 = vadd.f32 %v658_v54, %v643_v24  ;;  %v566_v19 = vsel %vm334_vm7, %v3895_v38, %v565_v3 }
 0x23a   : > { %v760_v41 = vpop.permute.xlu0 %759  ;;  %v554_v28 = vadd.f32 %v548_v14, %v540_v22  ;;  %v3897_v17 = vrot.slane %v2893_v47, 3  ;;  %v3898_v26 = vrot.slane %v2885_v1, 4  ;;  %v574_v24 = vadd.f32 %v565_v3, %v556_v25 }
 0x23b   : > { %v762_v4 = vpop.permute.xlu1 %761  ;;  %v673_v54 = vmul.f32 0.01831564, %v665_v32  ;;  %v674_v35 = vmul.f32 0.01831564, %v666_v2  ;;  %v698_v39 = vrot.slane %v665_v32, 2  ;;  %v701_v14 = vrot.slane %v666_v2, 2 }
 0x23c   : > { %v764_v15 = vsel %vm185_vm0, %v760_v41, %v762_v4  ;;  %v772_v18 = vadd.f32 %v762_v4, %v3896_v29  ;;  %v545_v56 = vsel %vm315_vm6, %v3897_v17, %v544_v12  ;;  %v563_v11 = vsel %vm334_vm7, %v3898_v26, %v562_v33  ;;  %v3899_v4 = vld [vmem:[#allocation7_spill] sm:$0xff] }
 0x23d   : > { %v553_v22 = vadd.f32 %v545_v56, %v539_v46  ;;  %v669_v16 = vmul.f32 1.12535176e-07, %v665_v32  ;;  %v680_v41 = vrot.slane %v673_v54, 1  ;;  %v771_v38 = vadd.f32 %v764_v15, %v3899_v4 }
 0x23e   : > { %v800_v34 = vpop.permute.xlu0 %799  ;;  %v572_v47 = vadd.f32 %v566_v19, %v554_v28  ;;  %v670_v29 = vmul.f32 1.12535176e-07, %v666_v2  ;;  %v683_v17 = vrot.slane %v674_v35, 1  ;;  %v794_v10 = vadd.f32 %v2632_v8, %v772_v18 }
 0x23f   : > { %v802_v60 = vpop.permute.xlu1 %801  ;;  %v573_v1 = vadd.f32 %v562_v33, %v555_v7  ;;  %v3900_v12 = vrot.slane %v2917_v21, 1  ;;  %v691_v46 = vadd.f32 %v680_v41, %v669_v16  ;;  %v712_v3 = vrot.slane %v673_v54, 3 }
 0x240   : > { %v3901_v56 = vrot.slane %v2901_v0, 1  ;;  %v692_v15 = vadd.f32 %v683_v17, %v670_v29  ;;  %v3902_v2 = vrot.slane %v2887_v37, 2  ;;  %v3903_v18 = vrot.slane %v2874_v49, 2 }
 0x241   : > { %v681_v26 = vsel %vm277_vm4, %v3900_v12, %v680_v41  ;;  %v709_v54 = vadd.f32 %v698_v39, %v691_v46  ;;  %v793_v41 = vadd.f32 %v2871_v30, %v771_v38  ;;  %v715_v12 = vrot.slane %v674_v35, 3 }
 0x242   : > { %v822_v25 = vpop.permute.xlu0 %821  ;;  %v684_v32 = vsel %vm277_vm4, %v3901_v56, %v683_v17  ;;  %v689_v62 = vadd.f32 %v681_v26, %v2929_v44  ;;  %v699_v28 = vsel %vm300_vm5, %v3902_v2, %v698_v39  ;;  %v702_v7 = vsel %vm300_vm5, %v3903_v18, %v701_v14 }
 0x243   : > { %v824_v19 = vpop.permute.xlu1 %823  ;;  %v690_v33 = vadd.f32 %v684_v32, %v2908_v61  ;;  %v710_v4 = vadd.f32 %v701_v14, %v692_v15  ;;  %v804_v56 = vsel %vm231_vm2, %v800_v34, %v802_v60  ;;  %v812_v26 = vadd.f32 %v802_v60, %v794_v10 }
 0x244   : > { %v707_v17 = vadd.f32 %v699_v28, %v689_v62  ;;  %v811_v37 = vadd.f32 %v804_v56, %v793_v41  ;;  %v826_v2 = vsel %vm254_vm3, %v822_v25, %v824_v19  ;;  %v571_v55 = vadd.f32 %v563_v11, %v553_v22 }
 0x245   : > { %v708_v13 = vadd.f32 %v702_v7, %v690_v33  ;;  %v3108_v32 = vmul.f32 0.17265715, %v574_v24  ;;  %v723_v49 = vadd.f32 %v712_v3, %v709_v54  ;;  %v834_v52 = vadd.f32 %v824_v19, %v812_v26 }
 0x246   : > { %v928_v31 = vpop.permute.xlu0 %927  ;;  %v724_v39 = vadd.f32 %v715_v12, %v710_v4  ;;  %v730_v46 = vrot.slane %v669_v16, 4  ;;  %v833_v38 = vadd.f32 %v826_v2, %v811_v37  ;;  %v3904_v34 = vrot.slane %v2917_v21, 3 }
 0x247   : > { %v930_v18 = vpop.permute.xlu1 %929  ;;  %v3905_v60 = vrot.slane %v2901_v0, 3  ;;  %v733_v10 = vrot.slane %v670_v29, 4  ;;  %v3117_v11 = vmul.f32 0.01831564, %v834_v52  ;;  %v3119_v22 = vmul.f32 0.17265715, %v572_v47 }
 0x248   : > { %v932_v35 = vsel %vm185_vm0, %v928_v31, %v930_v18  ;;  %v713_v62 = vsel %vm315_vm6, %v3904_v34, %v712_v3  ;;  %v3121_v25 = vmul.f32 0.0, %v574_v24  ;;  %v3123_v19 = vmul.f32 0.17265715, %v573_v1 }
 0x249   : > { %v716_v14 = vsel %vm315_vm6, %v3905_v60, %v715_v12  ;;  %v721_v15 = vadd.f32 %v713_v62, %v707_v17  ;;  %v741_v31 = vadd.f32 %v730_v46, %v723_v49  ;;  %v3125_v21 = vmul.f32 0.01831564, %v833_v38 }
 0x24a   : > { %v722_v16 = vadd.f32 %v716_v14, %v708_v13  ;;  %v950_v28 = vpop.permute.xlu0 %949  ;;  %v851_v3 = vrot.slane %v3117_v11, 1  ;;  %v3128_v33 = vmul.f32 0.17265715, %v571_v55  ;;  %v3130_v29 = vmul.f32 0.0, %v572_v47 }
 0x24b   : > { %v952_v0 = vpop.permute.xlu1 %951  ;;  %v3132_v7 = vmul.f32 0.0, %v573_v1  ;;  %v742_v54 = vadd.f32 %v733_v10, %v724_v39  ;;  %v3134_v24 = vmul.f32 0.0, %v571_v55  ;;  %v3909_v13 = vrot.slane %v2929_v44, 4 }
 0x24c   : > { %3906 = vst [vmem:[#allocation5_spill] sm:$0xff] %v3128_v33  ;;  %3907 = vst [vmem:[#allocation6_spill] sm:$0xff] %v3130_v29  ;;  %v3910_v4 = vrot.slane %v2908_v61, 4  ;;  %v3142_v56 = vmul.f32 1.12535176e-07, %v833_v38  ;;  %v848_v1 = vrot.slane %v3125_v21, 1 }
 0x24d   : > { %3908 = vst [vmem:[#allocation8_spill] sm:$0xff] %v3134_v24  ;;  %v731_v41 = vsel %vm334_vm7, %v3909_v13, %v730_v46  ;;  %v3148_v47 = vmul.f32 1.12535176e-07, %v834_v52  ;;  %v3151_v37 = vmul.f32 0.0, %v741_v31  ;;  %v3153_v44 = vmul.f32 0.17265715, %v741_v31 }
 0x24e   : > { %v734_v12 = vsel %vm334_vm7, %v3910_v4, %v733_v10  ;;  %v3144_v26 = vadd.f32 %v731_v41, %v721_v15  ;;  %v1078_v55 = vpop.permute.xlu0 %1077  ;;  %v3913_v2 = vrot.slane %v2935_v40, 1  ;;  %v866_v49 = vrot.slane %v833_v38, 2  ;;  %v3914_v15 = vld [vmem:[#allocation9_spill] sm:$0xff]  ;;  %v3915_v31 = vld [vmem:[#allocation10_spill] sm:$0xff]  ;;  %v3918_v10 = vld [vmem:[#allocation12_spill] sm:$0xff] }
 0x24f   : > { %v3146_v17 = vadd.f32 %v734_v12, %v722_v16  ;;  %v1080_v39 = vpop.permute.xlu1 %1079  ;;  %v3158_v46 = vmul.f32 0.0, %v742_v54  ;;  %v3160_v34 = vmul.f32 0.17265715, %v742_v54  ;;  %v860_v62 = vadd.f32 %v851_v3, %v3148_v47  ;;  %v3920_v29 = vld [vmem:[#allocation11_spill] sm:$0xff] }
 0x250   : > { %3911 = vst [vmem:[#allocation7_spill] sm:$0xff] %v3144_v26  ;;  %v852_v61 = vsel %vm277_vm4, %v3913_v2, %v851_v3  ;;  %v869_v60 = vrot.slane %v834_v52, 2  ;;  %v883_v14 = vrot.slane %v3117_v11, 3  ;;  %v939_v16 = vadd.f32 %v932_v35, %v3914_v15 }
 0x251   : > { %3912 = vst [vmem:[#allocation32_spill] sm:$0xff] %v3146_v17  ;;  %v940_v13 = vadd.f32 %v930_v18, %v3915_v31  ;;  %v858_v41 = vadd.f32 %v852_v61, %v2940_v36  ;;  %v859_v38 = vadd.f32 %v848_v1, %v3142_v56  ;;  %v954_v54 = vsel %vm231_vm2, %v950_v28, %v952_v0 }
 0x252   : > { %v972_v12 = vpop.permute.xlu0 %971  ;;  %v3916_v3 = vrot.slane %v2948_v63, 1  ;;  %v3917_v11 = vrot.slane %v2919_v57, 2  ;;  %v943_v18 = vadd.f32 %v939_v16, %v2833_v48  ;;  %v878_v15 = vadd.f32 %v869_v60, %v860_v62 }
 0x253   : > { %v944_v35 = vadd.f32 %v940_v13, %v2613_v5  ;;  %v974_v61 = vpop.permute.xlu1 %973  ;;  %v1082_v31 = vsel %vm185_vm0, %v1078_v55, %v1080_v39  ;;  %v1090_v4 = vadd.f32 %v1080_v39, %v3918_v10  ;;  %v3919_v24 = vrot.slane %v2904_v43, 2 }
 0x254   : > { %v849_v52 = vsel %vm277_vm4, %v3916_v3, %v848_v1  ;;  %v867_v2 = vsel %vm300_vm5, %v3917_v11, %v866_v49  ;;  %v976_v28 = vsel %vm254_vm3, %v972_v12, %v974_v61  ;;  %v961_v3 = vadd.f32 %v954_v54, %v943_v18 }
 0x255   : > { %v870_v1 = vsel %vm300_vm5, %v3919_v24, %v869_v60  ;;  %v962_v57 = vadd.f32 %v952_v0, %v944_v35  ;;  %v1089_v11 = vadd.f32 %v1082_v31, %v3920_v29  ;;  %v857_v5 = vadd.f32 %v849_v52, %v2955_v53 }
 0x256   : > { %v877_v13 = vadd.f32 %v866_v49, %v859_v38  ;;  %v3921_v48 = vrot.slane %v2935_v40, 3  ;;  %v1100_v55 = vpop.permute.xlu0 %1099  ;;  %v1094_v39 = vadd.f32 %v1090_v4, %v2625_v6  ;;  %v876_v10 = vadd.f32 %v870_v1, %v858_v41 }
 0x257   : > { %v983_v16 = vadd.f32 %v976_v28, %v961_v3  ;;  %v984_v12 = vadd.f32 %v974_v61, %v962_v57  ;;  %v1102_v43 = vpop.permute.xlu1 %1101  ;;  %v1093_v24 = vadd.f32 %v1089_v11, %v2838_v23  ;;  %v892_v60 = vadd.f32 %v883_v14, %v878_v15 }
 0x258   : > { %v884_v62 = vsel %vm315_vm6, %v3921_v48, %v883_v14  ;;  %v901_v0 = vrot.slane %v3148_v47, 4  ;;  %v1104_v29 = vsel %vm231_vm2, %v1100_v55, %v1102_v43  ;;  %v1112_v54 = vadd.f32 %v1102_v43, %v1094_v39 }
 0x259   : > { %v987_v49 = vmul.f32 0.16901332, %v983_v16  ;;  %v3194_v38 = vmul.f32 0.16901332, %v984_v12  ;;  %v991_v40 = vmul.f32 0.6411804, %v983_v16  ;;  %v1111_v52 = vadd.f32 %v1104_v29, %v1093_v24 }
 0x25a   : > { %v3922_v35 = vrot.slane %v3125_v21, 3  ;;  %v992_v41 = vmul.f32 0.6411804, %v984_v12  ;;  %v1016_v4 = vrot.slane %v983_v16, 2  ;;  %v1019_v18 = vrot.slane %v984_v12, 2  ;;  %v1228_v61 = vpop.permute.xlu0 %1227 }
 0x25b   : > { %v998_v31 = vrot.slane %v991_v40, 1  ;;  %v1030_v23 = vrot.slane %v991_v40, 3  ;;  %v1048_v14 = vrot.slane %v987_v49, 4  ;;  %v1051_v47 = vrot.slane %v3194_v38, 4  ;;  %v1230_v15 = vpop.permute.xlu1 %1229 }
 0x25c   : > { %v891_v6 = vadd.f32 %v3922_v35, %v877_v13  ;;  %v1001_v28 = vrot.slane %v992_v41, 1  ;;  %v3923_v1 = vrot.slane %v2754_v58, 2  ;;  %v3924_v57 = vrot.slane %v2751_v45, 2 }
 0x25d   : > { %v1033_v13 = vrot.slane %v992_v41, 3  ;;  %v3925_v48 = vrot.slane %v2976_v27, 1  ;;  %v1009_v39 = vadd.f32 %v998_v31, %v987_v49  ;;  %v3926_v16 = vrot.slane %v2976_v27, 3 }
 0x25e   : > { %v1017_v3 = vsel %vm300_vm5, %v3923_v1, %v1016_v4  ;;  %v1020_v11 = vsel %vm300_vm5, %v3924_v57, %v1019_v18  ;;  %v3927_v43 = vrot.slane %v2983_v20, 4  ;;  %v3928_v24 = vrot.slane %v2962_v9, 1  ;;  %v1122_v41 = vpop.permute.xlu0 %1121 }
 0x25f   : > { %v999_v55 = vsel %vm277_vm4, %v3925_v48, %v998_v31  ;;  %v1031_v12 = vsel %vm315_vm6, %v3926_v16, %v1030_v23  ;;  %v1010_v40 = vadd.f32 %v1001_v28, %v3194_v38  ;;  %v3929_v35 = vrot.slane %v2962_v9, 3  ;;  %v1124_v16 = vpop.permute.xlu1 %1123 }
 0x260   : > { %v1049_v58 = vsel %vm334_vm7, %v3927_v43, %v1048_v14  ;;  %v1002_v45 = vsel %vm277_vm4, %v3928_v24, %v1001_v28  ;;  %v1007_v29 = vadd.f32 %v999_v55, %v2983_v20  ;;  %v1027_v31 = vadd.f32 %v1016_v4, %v1009_v39 }
 0x261   : > { %v1034_v49 = vsel %vm315_vm6, %v3929_v35, %v1033_v13  ;;  %v1008_v27 = vadd.f32 %v1002_v45, %v2973_v59  ;;  %v3930_v1 = vrot.slane %v2973_v59, 4  ;;  %v1232_v48 = vsel %vm185_vm0, %v1228_v61, %v1230_v15  ;;  %v3933_v35 = vld [vmem:[#allocation14_spill] sm:$0xff] }
 0x262   : > { %v3227_v43 = vadd.f32 %v867_v2, %v857_v5  ;;  %v3931_v20 = vrot.slane %v3142_v56, 4  ;;  %v3233_v9 = vadd.f32 %v901_v0, %v892_v60  ;;  %v1025_v28 = vadd.f32 %v1017_v3, %v1007_v29  ;;  %v1250_v26 = vpop.permute.xlu0 %1249 }
 0x263   : > { %v1052_v57 = vsel %vm334_vm7, %v3930_v1, %v1051_v47  ;;  %v1026_v55 = vadd.f32 %v1020_v11, %v1008_v27  ;;  %v1028_v24 = vadd.f32 %v1019_v18, %v1010_v40  ;;  %v1126_v4 = vsel %vm254_vm3, %v1122_v41, %v1124_v16  ;;  %v1252_v18 = vpop.permute.xlu1 %1251 }
 0x264   : > { %v3231_v38 = vadd.f32 %v3931_v20, %v891_v6  ;;  %v1134_v39 = vadd.f32 %v1124_v16, %v1112_v54  ;;  %v1039_v59 = vadd.f32 %v1031_v12, %v1025_v28  ;;  %v1041_v45 = vadd.f32 %v1030_v23, %v1027_v31 }
 0x265   : > { %v1240_v1 = vadd.f32 %v1230_v15, %v3933_v35  ;;  %v1133_v61 = vadd.f32 %v1126_v4, %v1111_v52  ;;  %v3237_v2 = vadd.f32 %v884_v62, %v876_v10  ;;  %v3934_v5 = vrot.slane %v2940_v36, 4  ;;  %v3936_v10 = vld [vmem:[#allocation13_spill] sm:$0xff]  ;;  %v3939_v4 = vld [vmem:[#allocation28_spill] sm:$0xff] }
 0x266   : > { %3932 = vst [vmem:[#allocation9_spill] sm:$0xff] %v3231_v38  ;;  %v1040_v60 = vadd.f32 %v1034_v49, %v1026_v55  ;;  %v3244_v3 = vmul.f32 0.6411804, %v1134_v39  ;;  %v3246_v11 = vadd.f32 %v1049_v58, %v1039_v59  ;;  %v3251_v15 = vmul.f32 0.0, %v3233_v9  ;;  %v1272_v49 = vpop.permute.xlu0 %1271  ;;  %v3940_v59 = vld [vmem:[#allocation24_spill] sm:$0xff] }
 0x267   : > { %v3242_v6 = vsel %vm334_vm7, %v3934_v5, %v901_v0  ;;  %v3248_v54 = vmul.f32 0.16901332, %v1133_v61  ;;  %v1141_v23 = vmul.f32 0.6411804, %v1133_v61  ;;  %v1042_v52 = vadd.f32 %v1033_v13, %v1028_v24  ;;  %v1274_v13 = vpop.permute.xlu1 %1273 }
 0x268   : > { %3935 = vst [vmem:[#allocation10_spill] sm:$0xff] %v3246_v11  ;;  %v3253_v62 = vadd.f32 %v1052_v57, %v1040_v60  ;;  %v1239_v36 = vadd.f32 %v1232_v48, %v3936_v10  ;;  %v3257_v0 = vmul.f32 0.0, %v3231_v38  ;;  %v1059_v12 = vadd.f32 %v1048_v14, %v1041_v45  ;;  %v3943_v60 = vld [vmem:[#allocation23_spill] sm:$0xff] }
 0x269   : > { %v3259_v29 = vmul.f32 0.16901332, %v1134_v39  ;;  %v1148_v40 = vrot.slane %v1141_v23, 1  ;;  %v1244_v58 = vadd.f32 %v1240_v1, %v2632_v8  ;;  %v1151_v41 = vrot.slane %v3244_v3, 1  ;;  %v3942_v1 = vld [vmem:[#allocation27_spill] sm:$0xff] }
 0x26a   : > { %v1166_v27 = vrot.slane %v1133_v61, 2  ;;  %v1169_v31 = vrot.slane %v1134_v39, 2  ;;  %v1180_v16 = vrot.slane %v1141_v23, 3  ;;  %v3937_v57 = vrot.slane %v2995_v42, 1  ;;  %v3286_v10 = vpop.permute.xlu0 %1575 }
 0x26b   : > { %v1159_v20 = vadd.f32 %v1148_v40, %v3248_v54  ;;  %v1183_v14 = vrot.slane %v3244_v3, 3  ;;  %v3849_v28 = vrot.slane %v3248_v54, 4  ;;  %v3269_v55 = vadd.f32 %v1051_v47, %v1042_v52 }
 0x26c   : > { %v1149_v48 = vsel %vm277_vm4, %v3937_v57, %v1148_v40  ;;  %v3938_v8 = vrot.slane %v2989_v50, 1  ;;  %v3941_v45 = vrot.slane %v3940_v59, 2  ;;  %v1160_v5 = vadd.f32 %v1151_v41, %v3259_v29  ;;  %v3296_v59 = vpop.permute.xlu1 %1577 }
 0x26d   : > { %v1157_v39 = vadd.f32 %v1149_v48, %v3939_v4  ;;  %v3944_v3 = vrot.slane %v3943_v60, 2  ;;  %v3945_v47 = vrot.slane %v2995_v42, 3  ;;  %v1367_v40 = vmul.f32 0.0, %v1059_v12 }
 0x26e   : > { %v1152_v24 = vsel %vm277_vm4, %v3938_v8, %v1151_v41  ;;  %v1167_v35 = vsel %vm300_vm5, %v3941_v45, %v1166_v27  ;;  %v3946_v48 = vrot.slane %v2989_v50, 3  ;;  %v3947_v41 = vrot.slane %v3939_v4, 4  ;;  %v3305_v11 = vpop.permute.xlu0 %1579 }
 0x26f   : > { %v1158_v61 = vadd.f32 %v1152_v24, %v3942_v1  ;;  %v1170_v23 = vsel %vm300_vm5, %v3944_v3, %v1169_v31  ;;  %v1181_v52 = vsel %vm315_vm6, %v3945_v47, %v1180_v16  ;;  %v1175_v57 = vadd.f32 %v1167_v35, %v1157_v39 }
 0x270   : > { %v1184_v8 = vsel %vm315_vm6, %v3946_v48, %v1183_v14  ;;  %v1199_v24 = vsel %vm334_vm7, %v3947_v41, %v3849_v28  ;;  %v1177_v42 = vadd.f32 %v1166_v27, %v1159_v20  ;;  %v1201_v60 = vrot.slane %v3259_v29, 4  ;;  %v3312_v20 = vpop.permute.xlu1 %1581 }
 0x271   : > { %v1176_v45 = vadd.f32 %v1170_v23, %v1158_v61  ;;  %v1243_v3 = vadd.f32 %v1239_v36, %v2871_v30  ;;  %v1368_v39 = vmul.f32 0.0, %v3269_v55  ;;  %v1189_v35 = vadd.f32 %v1181_v52, %v1175_v57 }
 0x272   : > { %v1254_v50 = vsel %vm231_vm2, %v1250_v26, %v1252_v18  ;;  %v1262_v47 = vadd.f32 %v1252_v18, %v1244_v58  ;;  %v1178_v48 = vadd.f32 %v1169_v31, %v1160_v5  ;;  %v3948_v4 = vrot.slane %v3942_v1, 4 }
 0x273   : > { %v1190_v33 = vadd.f32 %v1184_v8, %v1176_v45  ;;  %v1261_v28 = vadd.f32 %v1254_v50, %v1243_v3  ;;  %v3307_v27 = vmul.f32 -0.17265715, %v1059_v12  ;;  %v3309_v29 = vadd.f32 %v1199_v24, %v1189_v35  ;;  %v1554_v24 = vpop.permute.xlu0 %1553  ;;  %v3951_v45 = vld [vmem:[#allocation25_spill] sm:$0xff]  ;;  %v3953_v50 = vld [vmem:[#allocation26_spill] sm:$0xff] }
 0x274   : > { %v1202_v41 = vsel %vm334_vm7, %v3948_v4, %v1201_v60  ;;  %v1276_v30 = vsel %vm254_vm3, %v1272_v49, %v1274_v13  ;;  %v1284_v36 = vadd.f32 %v1274_v13, %v1262_v47  ;;  %v3314_v26 = vmul.f32 -0.08632857, %v1059_v12 }
 0x275   : > { %3949 = vst [vmem:[#allocation12_spill] sm:$0xff] %v3309_v29  ;;  %v1191_v18 = vadd.f32 %v1180_v16, %v1177_v42  ;;  %v3316_v58 = vadd.f32 %v1202_v41, %v1190_v33  ;;  %v1283_v31 = vadd.f32 %v1276_v30, %v1261_v28  ;;  %v1372_v23 = vadd.f32 %v1368_v39, %v3108_v32  ;;  %v1556_v42 = vpop.permute.xlu1 %1555  ;;  %v3957_v41 = vld [vmem:[#allocation29_spill] sm:$0xff] }
 0x276   : > { %v1288_v1 = vmul.f32 0.16901332, %v1284_v36  ;;  %v1292_v61 = vmul.f32 0.6411804, %v1284_v36  ;;  %v1319_v5 = vrot.slane %v1284_v36, 2  ;;  %v1192_v52 = vadd.f32 %v1183_v14, %v1178_v48 }
 0x277   : > { %3950 = vst [vmem:[#allocation11_spill] sm:$0xff] %v3316_v58  ;;  %v1291_v57 = vmul.f32 0.6411804, %v1283_v31  ;;  %v1316_v8 = vrot.slane %v1283_v31, 2  ;;  %v1371_v49 = vadd.f32 %v1367_v40, %v3123_v19  ;;  %v3952_v3 = vrot.slane %v3951_v45, 2 }
 0x278   : > { %v1301_v13 = vrot.slane %v1292_v61, 1  ;;  %v1333_v16 = vrot.slane %v1292_v61, 3  ;;  %v1351_v33 = vrot.slane %v1288_v1, 4  ;;  %v3323_v28 = vmul.f32 0.16901332, %v1283_v31  ;;  %v3959_v31 = vld [vmem:[#allocation31_spill] sm:$0xff] }
 0x279   : > { %v1320_v12 = vsel %vm300_vm5, %v3952_v3, %v1319_v5  ;;  %v1298_v35 = vrot.slane %v1291_v57, 1  ;;  %v3954_v47 = vrot.slane %v3953_v50, 2  ;;  %v1330_v14 = vrot.slane %v1291_v57, 3 }
 0x27a   : > { %v3955_v39 = vrot.slane %v3023_v51, 1  ;;  %v1310_v40 = vadd.f32 %v1301_v13, %v1288_v1  ;;  %v3956_v48 = vrot.slane %v3023_v51, 3  ;;  %v3958_v30 = vrot.slane %v3957_v41, 4  ;;  %v1722_v51 = vpop.permute.xlu0 %1721 }
 0x27b   : > { %v1317_v32 = vsel %vm300_vm5, %v3954_v47, %v1316_v8  ;;  %v3960_v61 = vrot.slane %v3959_v31, 1  ;;  %v1309_v3 = vadd.f32 %v1298_v35, %v3323_v28  ;;  %v3961_v50 = vrot.slane %v3959_v31, 3 }
 0x27c   : > { %v1302_v19 = vsel %vm277_vm4, %v3955_v39, %v1301_v13  ;;  %v1334_v4 = vsel %vm315_vm6, %v3956_v48, %v1333_v16  ;;  %v3337_v36 = vsel %vm334_vm7, %v3958_v30, %v1351_v33  ;;  %v1430_v13 = vmul.f32 -0.17265715, %v3269_v55  ;;  %v3964_v48 = vld [vmem:[#allocation30_spill] sm:$0xff] }
 0x27d   : > { %v1299_v45 = vsel %vm277_vm4, %v3960_v61, %v1298_v35  ;;  %v1308_v57 = vadd.f32 %v1302_v19, %v3957_v41  ;;  %v3347_v1 = vsel %vm315_vm6, %v3961_v50, %v1330_v14  ;;  %v3963_v47 = vrot.slane %v3248_v54, 4  ;;  %v1724_v61 = vpop.permute.xlu1 %1723 }
 0x27e   : > { %3962 = vst [vmem:[#allocation14_spill] sm:$0xff] %v3347_v1  ;;  %v1307_v30 = vadd.f32 %v1299_v45, %v3964_v48  ;;  %v1328_v29 = vadd.f32 %v1319_v5, %v1310_v40  ;;  %v1210_v58 = vadd.f32 %v1201_v60, %v1192_v52  ;;  %v1327_v41 = vadd.f32 %v1316_v8, %v1309_v3  ;;  %v3965_v1 = vld [vmem:[#allocation16_spill] sm:$0xff]  ;;  %v1594_v5 = vpop.permute.xlu0 %1593  ;;  %v3966_v52 = vld [vmem:[#allocation15_spill] sm:$0xff] }
 0x27f   : > { %v3352_v39 = vadd.f32 %v3963_v47, %v1191_v18  ;;  %v1326_v19 = vadd.f32 %v1320_v12, %v1308_v57  ;;  %v1561_v35 = vsel %vm185_vm0, %v1554_v24, %v1556_v42  ;;  %v1568_v17 = vadd.f32 %v1556_v42, %v3965_v1  ;;  %v3968_v42 = vld [vmem:[#allocation18_spill] sm:$0xff] }
 0x280   : > { %v3356_v31 = vadd.f32 %v1317_v32, %v1307_v30  ;;  %v1342_v50 = vadd.f32 %v1333_v16, %v1328_v29  ;;  %v1729_v38 = vsel %vm185_vm0, %v1722_v51, %v1724_v61  ;;  %v1481_v54 = vmul.f32 -0.08632857, %v3269_v55  ;;  %v3967_v16 = vld [vmem:[#allocation17_spill] sm:$0xff] }
 0x281   : > { %v1340_v18 = vadd.f32 %v1334_v4, %v1326_v19  ;;  %v1341_v47 = vadd.f32 %v1330_v14, %v1327_v41  ;;  %v1348_v45 = vrot.slane %v3323_v28, 4  ;;  %v1583_v60 = vsel %vm212_vm1, %v3286_v10, %v3296_v59  ;;  %v1596_v24 = vpop.permute.xlu1 %1595  ;;  %v3982_v28 = vld [vmem:[#allocation7_spill] sm:$0xff] }
 0x282   : > { %v1360_v40 = vadd.f32 %v1351_v33, %v1342_v50  ;;  %v1567_v8 = vadd.f32 %v1561_v35, %v3966_v52  ;;  %v1380_v29 = vadd.f32 %v3158_v46, %v1372_v23  ;;  %v1735_v55 = vadd.f32 %v1729_v38, %v3967_v16  ;;  %v1744_v1 = vpop.permute.xlu0 %1743 }
 0x283   : > { %v1359_v12 = vadd.f32 %v1348_v45, %v1341_v47  ;;  %v1736_v32 = vadd.f32 %v1724_v61, %v3968_v42  ;;  %v1384_v14 = vmul.f32 -0.17265715, %v1210_v58  ;;  %v1590_v33 = vadd.f32 %v3296_v59, %v1568_v17 }
 0x284   : > { %v3371_v4 = vmul.f32 0.0, %v1360_v40  ;;  %v1379_v57 = vadd.f32 %v3151_v37, %v1371_v49  ;;  %v1383_v10 = vmul.f32 -0.17265715, %v3352_v39  ;;  %v1434_v51 = vadd.f32 %v1430_v13, %v3121_v25 }
 0x285   : > { %v3376_v3 = vmul.f32 0.0, %v1359_v12  ;;  %v1388_v23 = vadd.f32 %v1384_v14, %v1380_v29  ;;  %v1446_v30 = vmul.f32 0.0, %v1210_v58  ;;  %v1746_v19 = vpop.permute.xlu1 %1745  ;;  %v1433_v61 = vadd.f32 %v3307_v27, %v3132_v7 }
 0x286   : > { %v1387_v38 = vadd.f32 %v1383_v10, %v1379_v57  ;;  %v1445_v41 = vmul.f32 0.0, %v3352_v39  ;;  %v1485_v17 = vadd.f32 %v1481_v54, %v3121_v25  ;;  %v1589_v35 = vadd.f32 %v1583_v60, %v1567_v8  ;;  %v1616_v12 = vpop.permute.xlu0 %1615 }
 0x287   : > { %v1601_v49 = vsel %vm231_vm2, %v1594_v5, %v1596_v24  ;;  %v1396_v50 = vadd.f32 %v3251_v15, %v1388_v23  ;;  %v1442_v47 = vadd.f32 %v3160_v34, %v1434_v51  ;;  %v1608_v40 = vadd.f32 %v1596_v24, %v1590_v33 }
 0x288   : > { %v1395_v13 = vadd.f32 %v3257_v0, %v1387_v38  ;;  %v1441_v52 = vadd.f32 %v3153_v44, %v1433_v61  ;;  %v1489_v29 = vadd.f32 %v1485_v17, %v3158_v46  ;;  %v1493_v25 = vmul.f32 -0.08632857, %v1210_v58 }
 0x289   : > { %v3390_v27 = vadd.f32 %v3371_v4, %v1396_v50  ;;  %v1450_v16 = vadd.f32 %v1446_v30, %v1442_v47  ;;  %v1484_v54 = vadd.f32 %v3314_v26, %v3132_v7  ;;  %v1607_v5 = vadd.f32 %v1601_v49, %v1589_v35  ;;  %v1618_v8 = vpop.permute.xlu1 %1617 }
 0x28a   : > { %v3395_v34 = vadd.f32 %v3376_v3, %v1395_v13  ;;  %v1449_v24 = vadd.f32 %v1445_v41, %v1441_v52  ;;  %v1358_v42 = vadd.f32 %v3337_v36, %v1340_v18  ;;  %v1751_v44 = vsel %vm231_vm2, %v1744_v1, %v1746_v19  ;;  %v1766_v23 = vpop.permute.xlu0 %1765 }
 0x28b   : > { %v1623_v46 = vsel %vm254_vm3, %v1616_v12, %v1618_v8  ;;  %v1454_v14 = vadd.f32 %v1450_v16, %v3251_v15  ;;  %v1497_v33 = vadd.f32 %v1493_v25, %v1489_v29  ;;  %v3403_v58 = vadd.f32 %v1618_v8, %v1608_v40  ;;  %v3974_v40 = vld [vmem:[#allocation32_spill] sm:$0xff] }
 0x28c   : > { %v3401_v57 = vadd.f32 %v1623_v46, %v1607_v5  ;;  %v1453_v7 = vadd.f32 %v1449_v24, %v3257_v0  ;;  %v1488_v26 = vadd.f32 %v1484_v54, %v3151_v37  ;;  %v1739_v10 = vadd.f32 %v1735_v55, %v1583_v60 }
 0x28d   : > { %v3408_v51 = vadd.f32 %v1454_v14, %v3371_v4  ;;  %v1492_v36 = vmul.f32 -0.08632857, %v3352_v39  ;;  %v1366_v18 = vmul.f32 0.0, %v3253_v62  ;;  %v3969_v15 = vrot.slane %v3125_v21, 3  ;;  %v1768_v60 = vpop.permute.xlu1 %1767  ;;  %v3975_v14 = vld [vmem:[#allocation20_spill] sm:$0xff] }
 0x28e   : > { %v3970_v1 = vrot.slane %v2948_v63, 3  ;;  %v3971_v38 = vrot.slane %v3142_v56, 4  ;;  %v3972_v0 = vrot.slane %v2955_v53, 4  ;;  %v3423_v55 = vadd.f32 %v1453_v7, %v3376_v3 }
 0x28f   : > { %v3427_v39 = vadd.f32 %v3242_v6, %v3237_v2  ;;  %v1757_v61 = vadd.f32 %v1751_v44, %v1739_v10  ;;  %v1773_v63 = vsel %vm254_vm3, %v1766_v23, %v1768_v60  ;;  %v1501_v41 = vmul.f32 0.17265715, %v3233_v9  ;;  %v1558_v6 = vpop.permute.xlu0 %1557 }
 0x290   : > { %v881_v30 = vsel %vm315_vm6, %v3970_v1, %v3969_v15  ;;  %v899_v37 = vsel %vm334_vm7, %v3972_v0, %v3971_v38  ;;  %v1740_v56 = vadd.f32 %v1736_v32, %v3296_v59  ;;  %v3434_v53 = vmul.f32 1.4945338e-05, %v3403_v58  ;;  %v3973_v32 = vld [vmem:[#allocation9_spill] sm:$0xff]  ;;  %v3976_v1 = vld [vmem:[#allocation11_spill] sm:$0xff] }
 0x291   : > { %v889_v21 = vadd.f32 %v881_v30, %v3227_v43  ;;  %v3437_v17 = vmul.f32 0.062176526, %v3401_v57  ;;  %v3440_v35 = vmul.f32 0.062176526, %v3403_v58  ;;  %v3442_v2 = vadd.f32 %v1773_v63, %v1757_v61  ;;  %v1560_v59 = vpop.permute.xlu1 %1559  ;;  %v3977_v38 = vld [vmem:[#allocation19_spill] sm:$0xff] }
 0x292   : > { %v1505_v43 = vadd.f32 %v1501_v41, %v1497_v33  ;;  %v1496_v49 = vadd.f32 %v1492_v36, %v1488_v26  ;;  %v1370_v50 = vadd.f32 %v1366_v18, %v3119_v22  ;;  %v3448_v9 = vsel %vm212_vm1, %v3305_v11, %v3312_v20 }
 0x293   : > { %v1500_v47 = vmul.f32 0.17265715, %v3973_v32  ;;  %v3452_v13 = vmul.f32 0.0, %v3974_v40  ;;  %v3455_v52 = vmul.f32 0.0, %v3427_v39  ;;  %v1758_v29 = vadd.f32 %v1746_v19, %v1740_v56  ;;  %v1726_v46 = vpop.permute.xlu0 %1725 }
 0x294   : > { %v3458_v12 = vmul.f32 1.4945338e-05, %v3401_v57  ;;  %v1645_v11 = vrot.slane %v3437_v17, 1  ;;  %v1648_v25 = vrot.slane %v3440_v35, 1  ;;  %v3470_v19 = vmul.f32 0.29096046, %v3442_v2 }
 0x295   : > { %v3467_v24 = vadd.f32 %v1768_v60, %v1758_v29  ;;  %v1562_v44 = vsel %vm185_vm0, %v1558_v6, %v1560_v59  ;;  %v1570_v33 = vadd.f32 %v1560_v59, %v3975_v14  ;;  %v1728_v7 = vpop.permute.xlu1 %1727  ;;  %v3475_v26 = vadd.f32 %v1505_v43, %v3371_v4  ;;  %v3978_v4 = vld [vmem:[#allocation14_spill] sm:$0xff] }
 0x296   : > { %v1504_v10 = vadd.f32 %v1500_v47, %v1496_v49  ;;  %v1378_v23 = vadd.f32 %v3452_v13, %v1370_v50  ;;  %v3480_v18 = vmul.f32 0.73444366, %v3442_v2  ;;  %v1382_v30 = vmul.f32 -0.17265715, %v3976_v1  ;;  %v3980_v50 = vld [vmem:[#allocation10_spill] sm:$0xff] }
 0x297   : > { %v1569_v0 = vadd.f32 %v1562_v44, %v3977_v38  ;;  %v3488_v61 = vmul.f32 0.0, %v1358_v42  ;;  %v1339_v63 = vadd.f32 %v3978_v4, %v3356_v31  ;;  %v3493_v41 = vmul.f32 0.29096046, %v3467_v24  ;;  %v1598_v56 = vpop.permute.xlu0 %1597  ;;  %v3981_v44 = vld [vmem:[#allocation5_spill] sm:$0xff] }
 0x298   : > { %v3486_v60 = vadd.f32 %v1504_v10, %v3376_v3  ;;  %v1386_v6 = vadd.f32 %v1382_v30, %v1378_v23  ;;  %v3979_v43 = vrot.slane %v3964_v48, 4  ;;  %v1365_v59 = vmul.f32 0.0, %v3980_v50  ;;  %v3983_v48 = vld [vmem:[#allocation12_spill] sm:$0xff]  ;;  %v3984_v30 = vld [vmem:[#allocation22_spill] sm:$0xff] }
 0x299   : > { %v3502_v3 = vmul.f32 0.73444366, %v3467_v24  ;;  %v1592_v42 = vadd.f32 %v3312_v20, %v1570_v33  ;;  %v1600_v32 = vpop.permute.xlu1 %1599  ;;  %v3505_v31 = vadd.f32 %v899_v37, %v889_v21  ;;  %v3510_v10 = vmul.f32 0.0, %v3982_v28 }
 0x29a   : > { %v1349_v49 = vsel %vm334_vm7, %v3979_v43, %v1348_v45  ;;  %v1394_v29 = vadd.f32 %v3455_v52, %v1386_v6  ;;  %v1369_v14 = vadd.f32 %v1365_v59, %v3981_v44  ;;  %v1381_v45 = vmul.f32 -0.17265715, %v3983_v48  ;;  %v3985_v59 = vld [vmem:[#allocation6_spill] sm:$0xff] }
 0x29b   : > { %v1357_v47 = vadd.f32 %v1349_v49, %v1339_v63  ;;  %v1730_v23 = vsel %vm185_vm0, %v1726_v46, %v1728_v7  ;;  %v1738_v38 = vadd.f32 %v1728_v7, %v3984_v30  ;;  %v1591_v4 = vadd.f32 %v3448_v9, %v1569_v0  ;;  %v1748_v63 = vpop.permute.xlu0 %1747 }
 0x29c   : > { %v1428_v33 = vmul.f32 -0.17265715, %v3253_v62  ;;  %v1602_v37 = vsel %vm231_vm2, %v1598_v56, %v1600_v32  ;;  %v1610_v21 = vadd.f32 %v1600_v32, %v1592_v42  ;;  %v3519_v6 = vadd.f32 %v3488_v61, %v1394_v29  ;;  %v3986_v29 = vld [vmem:[#allocation8_spill] sm:$0xff] }
 0x29d   : > { %v1377_v43 = vadd.f32 %v3510_v10, %v1369_v14  ;;  %v1750_v49 = vpop.permute.xlu1 %1749  ;;  %v1436_v46 = vmul.f32 0.17265715, %v3974_v40  ;;  %v1444_v7 = vmul.f32 0.0, %v3976_v1  ;;  %v1427_v0 = vmul.f32 -0.17265715, %v3980_v50 }
 0x29e   : > { %v1432_v44 = vadd.f32 %v1428_v33, %v3985_v59  ;;  %v3527_v36 = vmul.f32 0.0, %v3505_v31  ;;  %v3529_v56 = vmul.f32 0.0, %v1357_v47  ;;  %v1479_v42 = vmul.f32 -0.08632857, %v3253_v62  ;;  %v3987_v47 = vld [vmem:[#allocation21_spill] sm:$0xff] }
 0x29f   : > { %v1385_v30 = vadd.f32 %v1381_v45, %v1377_v43  ;;  %v1431_v14 = vadd.f32 %v1427_v0, %v3986_v29  ;;  %v1435_v8 = vmul.f32 0.17265715, %v3982_v28  ;;  %v1443_v33 = vmul.f32 0.0, %v3983_v48  ;;  %v1620_v40 = vpop.permute.xlu0 %1619 }
 0x2a0   : > { %v1440_v32 = vadd.f32 %v1436_v46, %v1432_v44  ;;  %v1483_v15 = vadd.f32 %v1479_v42, %v3985_v59  ;;  %v1491_v45 = vmul.f32 -0.08632857, %v3976_v1  ;;  %v1478_v43 = vmul.f32 -0.08632857, %v3980_v50 }
 0x2a1   : > { %v1393_v5 = vadd.f32 %v3527_v36, %v1385_v30  ;;  %v1737_v54 = vadd.f32 %v1730_v23, %v3987_v47  ;;  %v1609_v22 = vadd.f32 %v1602_v37, %v1591_v4  ;;  %v1622_v62 = vpop.permute.xlu1 %1621  ;;  %v1439_v46 = vadd.f32 %v1435_v8, %v1431_v14 }
 0x2a2   : > { %v1448_v44 = vadd.f32 %v1444_v7, %v1440_v32  ;;  %v1624_v0 = vsel %vm254_vm3, %v1620_v40, %v1622_v62  ;;  %v3541_v28 = vadd.f32 %v1622_v62, %v1610_v21  ;;  %v1487_v30 = vadd.f32 %v1483_v15, %v3452_v13 }
 0x2a3   : > { %v3544_v16 = vadd.f32 %v3529_v56, %v1393_v5  ;;  %v3547_v59 = vadd.f32 %v1624_v0, %v1609_v22  ;;  %v3550_v50 = vadd.f32 %v1443_v33, %v1439_v46  ;;  %v3553_v23 = vadd.f32 %v1478_v43, %v3986_v29  ;;  %v1770_v15 = vpop.permute.xlu0 %1769 }
 0x2a4   : > { %v1452_v1 = vadd.f32 %v1448_v44, %v3455_v52  ;;  %v1816_v8 = vrot.slane %v3467_v24, 2  ;;  %v1752_v4 = vsel %vm231_vm2, %v1748_v63, %v1750_v49  ;;  %v3558_v37 = vmul.f32 0.062176526, %v3541_v28 }
 0x2a5   : > { %v3560_v5 = vadd.f32 %v1491_v45, %v1487_v30  ;;  %v1742_v13 = vadd.f32 %v1738_v38, %v3312_v20  ;;  %v1741_v22 = vadd.f32 %v1737_v54, %v3448_v9  ;;  %v3565_v52 = vmul.f32 0.062176526, %v3547_v59  ;;  %v1772_v21 = vpop.permute.xlu1 %1771 }
 0x2a6   : > { %v3568_v7 = vadd.f32 %v1452_v1, %v3488_v61  ;;  %v1795_v24 = vrot.slane %v3480_v18, 1  ;;  %v1827_v63 = vrot.slane %v3480_v18, 3  ;;  %v3857_v32 = vrot.slane %v3558_v37, 1 }
 0x2a7   : > { %v1759_v29 = vadd.f32 %v1752_v4, %v1741_v22  ;;  %v1760_v20 = vadd.f32 %v1750_v49, %v1742_v13  ;;  %v3858_v9 = vrot.slane %v3565_v52, 1  ;;  %v3855_v54 = vrot.slane %v3541_v28, 2 }
 0x2a8   : > { %v3577_v38 = vmul.f32 1.4945338e-05, %v3541_v28  ;;  %v1650_v14 = vsel %vm277_vm4, %v1648_v25, %v3857_v32  ;;  %v3856_v18 = vrot.slane %v3547_v59, 2  ;;  %v1774_v33 = vsel %vm254_vm3, %v1770_v15, %v1772_v21 }
 0x2a9   : > { %v1798_v40 = vrot.slane %v3502_v3, 1  ;;  %v1647_v49 = vsel %vm277_vm4, %v1645_v11, %v3858_v9  ;;  %v1656_v45 = vadd.f32 %v1650_v14, %v3434_v53  ;;  %v3593_v43 = vadd.f32 %v1774_v33, %v1759_v29 }
 0x2aa   : > { %v1830_v47 = vrot.slane %v3502_v3, 3  ;;  %v1848_v25 = vrot.slane %v3493_v41, 4  ;;  %v3597_v62 = vadd.f32 %v1772_v21, %v1760_v20  ;;  %v1499_v44 = vmul.f32 0.17265715, %v3427_v39 }
 0x2ab   : > { %v3601_v46 = vmul.f32 1.4945338e-05, %v3547_v59  ;;  %v3988_v0 = vrot.slane %v3403_v58, 2  ;;  %v3859_v30 = vrot.slane %v3558_v37, 3  ;;  %v3610_v1 = vmul.f32 0.73444366, %v3593_v43 }
 0x2ac   : > { %v1655_v3 = vadd.f32 %v1647_v49, %v3458_v12  ;;  %v3989_v39 = vrot.slane %v3401_v57, 2  ;;  %v1699_v13 = vrot.slane %v3577_v38, 4  ;;  %v3620_v22 = vmul.f32 0.73444366, %v3597_v62 }
 0x2ad   : > { %v1668_v11 = vsel %vm300_vm5, %v3988_v0, %v3855_v54  ;;  %v1678_v15 = vrot.slane %v3565_v52, 3  ;;  %v1796_v21 = vrot.slane %v3610_v1, 1  ;;  %v1814_v29 = vrot.slane %v3593_v43, 2 }
 0x2ae   : > { %v1665_v4 = vsel %vm300_vm5, %v3989_v39, %v3856_v18  ;;  %v1674_v58 = vadd.f32 %v1668_v11, %v1656_v45  ;;  %v3626_v20 = vmul.f32 0.29096046, %v3593_v43  ;;  %v3629_v14 = vmul.f32 0.29096046, %v3597_v62 }
 0x2af   : > { %v1799_v57 = vrot.slane %v3620_v22, 1  ;;  %v1817_v33 = vrot.slane %v3597_v62, 2  ;;  %v3990_v49 = vrot.slane %v3440_v35, 3  ;;  %v1696_v0 = vrot.slane %v3601_v46, 4 }
 0x2b0   : > { %v1797_v11 = vsel %vm277_vm4, %v1795_v24, %v1796_v21  ;;  %v1831_v43 = vrot.slane %v3620_v22, 3  ;;  %v1673_v39 = vadd.f32 %v1665_v4, %v1655_v3  ;;  %v1828_v32 = vrot.slane %v3610_v1, 3 }
 0x2b1   : > { %v1682_v45 = vsel %vm315_vm6, %v3990_v49, %v3859_v30  ;;  %v1800_v54 = vsel %vm277_vm4, %v1798_v40, %v1799_v57  ;;  %v1805_v18 = vadd.f32 %v1797_v11, %v3470_v19  ;;  %v3991_v9 = vrot.slane %v3442_v2, 2 }
 0x2b2   : > { %v1806_v62 = vadd.f32 %v1800_v54, %v3493_v41  ;;  %v1688_v49 = vadd.f32 %v1682_v45, %v1674_v58  ;;  %v1490_v30 = vmul.f32 -0.08632857, %v3983_v48  ;;  %v1818_v24 = vsel %vm300_vm5, %v1816_v8, %v1817_v33 }
 0x2b3   : > { %v1815_v35 = vsel %vm300_vm5, %v3991_v9, %v1814_v29  ;;  %v1846_v3 = vrot.slane %v3626_v20, 4  ;;  %v1849_v40 = vrot.slane %v3629_v14, 4  ;;  %v1832_v22 = vsel %vm315_vm6, %v1830_v47, %v1831_v43 }
 0x2b4   : > { %v1823_v42 = vadd.f32 %v1815_v35, %v1805_v18  ;;  %v1824_v4 = vadd.f32 %v1818_v24, %v1806_v62  ;;  %v3992_v41 = vrot.slane %v3434_v53, 4  ;;  %v3993_v48 = vrot.slane %v3437_v17, 3 }
 0x2b5   : > { %v3994_v18 = vrot.slane %v3458_v12, 4  ;;  %v1829_v1 = vsel %vm315_vm6, %v1827_v63, %v1828_v32  ;;  %v1451_v45 = vadd.f32 %v3550_v50, %v3527_v36  ;;  %v1503_v11 = vadd.f32 %v1499_v44, %v3560_v5 }
 0x2b6   : > { %v1700_v2 = vsel %vm334_vm7, %v3992_v41, %v1699_v13  ;;  %v1679_v8 = vsel %vm315_vm6, %v3993_v48, %v1678_v15  ;;  %v1838_v58 = vadd.f32 %v1832_v22, %v1824_v4  ;;  %v1837_v53 = vadd.f32 %v1829_v1, %v1823_v42 }
 0x2b7   : > { %v1706_v9 = vadd.f32 %v1700_v2, %v1688_v49  ;;  %v1687_v54 = vadd.f32 %v1679_v8, %v1673_v39  ;;  %v1697_v47 = vsel %vm334_vm7, %v3994_v18, %v1696_v0  ;;  %v1850_v17 = vsel %vm334_vm7, %v1848_v25, %v1849_v40 }
 0x2b8   : > { %v3995_v39 = vrot.slane %v3470_v19, 4  ;;  %v1486_v12 = vadd.f32 %v3553_v23, %v3510_v10  ;;  %v1856_v49 = vadd.f32 %v1850_v17, %v1838_v58  ;;  %v1455_v63 = vadd.f32 %v1451_v45, %v3529_v56 }
 0x2b9   : > { %v1705_v62 = vadd.f32 %v1697_v47, %v1687_v54  ;;  %v1507_v42 = vadd.f32 %v1503_v11, %v3488_v61  ;;  %v1498_v36 = vmul.f32 0.17265715, %v3505_v31  ;;  %v1807_v61 = vadd.f32 %v1796_v21, %v3626_v20 }
 0x2ba   : > { %v1847_v35 = vsel %vm334_vm7, %v3995_v39, %v1846_v3  ;;  %v1494_v4 = vadd.f32 %v1490_v30, %v1486_v12  ;;  %v1860_v50 = vsub.f32 %v1706_v9, %v1856_v49  ;;  %v1808_v31 = vadd.f32 %v1799_v57, %v3629_v14 }
 0x2bb   : > { %v1855_v24 = vadd.f32 %v1847_v35, %v1837_v53  ;;  %v3996_v10 = vrot.slane %v3565_v52, 1  ;;  %v3998_v21 = vrot.slane %v3547_v59, 2  ;;  %v3999_v14 = vrot.slane %v3541_v28, 2 }
 0x2bc   : > { %v1502_v25 = vadd.f32 %v1498_v36, %v1494_v4  ;;  %v1864_v44 = vmul.f32 0.12432872, %v1860_v50 }
 0x2bd   : > { %v1859_v5 = vsub.f32 %v1705_v62, %v1855_v24  ;;  %v1657_v23 = vadd.f32 %v3996_v10, %v3601_v46 }
 0x2be   : > { %v1506_v19 = vadd.f32 %v1502_v25, %v3529_v56  ;;  %1873 = vrot.lane.b32.xlu1 %v1864_v44, %s2219_s14  ;;  %v3997_v56 = vrot.slane %v3558_v37, 1 }
 0x2bf   : > { %v1863_v22 = vmul.f32 0.12432872, %v1859_v5  ;;  %v1675_v20 = vadd.f32 %v3998_v21, %v1657_v23 }
 0x2c0   : > { %v1658_v30 = vadd.f32 %v3997_v56, %v3577_v38 }
 0x2c1   : > { %1871 = vrot.lane.b32.xlu0 %v1863_v22, %s2219_s14 }
 0x2c2   : > { %1415 = vrot.lane.b32.xlu1 %v3390_v27, %s2219_s14  ;;  %v1825_v27 = vadd.f32 %v1814_v29, %v1807_v61  ;;  %v1676_v57 = vadd.f32 %v3999_v14, %v1658_v30 }
 0x2c4   : > { %v1839_v41 = vadd.f32 %v1828_v32, %v1825_v27 }
 0x2c5   : > { %1413 = vrot.lane.b32.xlu0 %v3395_v34, %s2219_s14  ;;  %v1826_v34 = vadd.f32 %v1817_v33, %v1808_v31 }
 0x2c6   : > { %1469 = vrot.lane.b32.xlu1 %v3408_v51, %s2219_s14  ;;  %v1689_v51 = vadd.f32 %v1678_v15, %v1675_v20  ;;  %v1857_v28 = vadd.f32 %v1846_v3, %v1839_v41 }
 0x2c7   : > { %v1840_v2 = vadd.f32 %v1831_v43, %v1826_v34 }
 0x2c8   : > { %v1707_v59 = vadd.f32 %v1696_v0, %v1689_v51 }
 0x2c9   : > { %1467 = vrot.lane.b32.xlu0 %v3423_v55, %s2219_s14  ;;  %v4000_v55 = vrot.slane %v3558_v37, 3 }
 0x2ca   : > { %1520 = vrot.lane.b32.xlu1 %v3475_v26, %s2219_s14  ;;  %v1858_v26 = vadd.f32 %v1849_v40, %v1840_v2 }
 0x2cb   : > { %v1690_v29 = vadd.f32 %v4000_v55, %v1676_v57 }
 0x2cd   : > { %1518 = vrot.lane.b32.xlu0 %v3486_v60, %s2219_s14  ;;  %v1708_v60 = vadd.f32 %v1699_v13, %v1690_v29 }
 0x2ce   : > { %1411 = vrot.lane.b32.xlu1 %v3519_v6, %s2219_s14  ;;  %v1861_v6 = vsub.f32 %v1707_v59, %v1857_v28 }
 0x2cf   : > { %v1862_v37 = vsub.f32 %v1708_v60, %v1858_v26 }
 0x2d0   : > { %v1865_v52 = vmul.f32 0.12432872, %v1861_v6 }
 0x2d1   : > { %1409 = vrot.lane.b32.xlu0 %v3544_v16, %s2219_s14  ;;  %v1866_v16 = vmul.f32 0.12432872, %v1862_v37 }
 0x2d2   : > { %1465 = vrot.lane.b32.xlu1 %v3568_v7, %s2219_s14 }
 0x2d5   : > { %1463 = vrot.lane.b32.xlu0 %v1455_v63, %s2219_s14 }
 0x2d6   : > { %1516 = vrot.lane.b32.xlu1 %v1507_v42, %s2219_s14 }
 0x2d9   : > { %1514 = vrot.lane.b32.xlu0 %v1506_v19, %s2219_s14 }
 0x2da   : > { %1877 = vrot.lane.b32.xlu1 %v1866_v16, %s2219_s14 }
 0x2dd   : > { %1875 = vrot.lane.b32.xlu0 %v1865_v52, %s2219_s14  ;;  %s2128_s14 = scalar_lea.vmem %s2127_s5, 1024 }
 0x2de   : > { %p2130_p4 = scmp.lt.s32.totalorder %s2128_s14, %s2122_s3 }
 0x2e0   : > { %p2131_p5 = por %p2130_p4, %p2129_p2 }
 0x2e2   : > { %p2132_p6 = pnand %p2131_p5, %p2125_p1 }
 0x330   : > { %v1874_v7 = vpop.permute.xlu1 %1873 }
 0x333   : > { %v1872_v32 = vpop.permute.xlu0 %1871 }
 0x334   : > { %v1879_v38 = vsel %vm212_vm1, %v1872_v32, %v1874_v7  ;;  %v1416_v46 = vpop.permute.xlu1 %1415 }
 0x335   : > { %2024 = vst [vmem:[%s3731_s25 + $0x16] sm:$0xfc] %v1879_v38 }
 0x337   : > { %v1414_v13 = vpop.permute.xlu0 %1413 }
 0x338   : > { %v1418_v15 = vsel %vm212_vm1, %v1414_v13, %v1416_v46  ;;  %v1470_v33 = vpop.permute.xlu1 %1469 }
 0x339   : > { %1422 = vst [vmem:[%s3731_s25 + $0x6] sm:$0x3] %v1418_v15 }
 0x33b   : > { %v1468_v0 = vpop.permute.xlu0 %1467 }
 0x33c   : > { %v1472_v43 = vsel %vm212_vm1, %v1468_v0, %v1470_v33  ;;  %v1521_v3 = vpop.permute.xlu1 %1520 }
 0x33d   : > { %2021 = vst [vmem:[%s3731_s25 + $0xe] sm:$0x3] %v1472_v43 }
 0x33f   : > { %v1519_v40 = vpop.permute.xlu0 %1518 }
 0x340   : > { %v1523_v48 = vsel %vm212_vm1, %v1519_v40, %v1521_v3  ;;  %v1412_v8 = vpop.permute.xlu1 %1411 }
 0x341   : > { %2023 = vst [vmem:[%s3731_s25 + $0x16] sm:$0x3] %v1523_v48 }
 0x343   : > { %v1410_v9 = vpop.permute.xlu0 %1409 }
 0x344   : > { %v1417_v54 = vsel %vm212_vm1, %v1410_v9, %v1412_v8  ;;  %v1466_v18 = vpop.permute.xlu1 %1465 }
 0x345   : > { %1421 = vst [vmem:[%s3731_s25 - $0x2] sm:$0xfc] %v1417_v54 }
 0x347   : > { %v1464_v47 = vpop.permute.xlu0 %1463 }
 0x348   : > { %v1471_v1 = vsel %vm212_vm1, %v1464_v47, %v1466_v18  ;;  %v1517_v58 = vpop.permute.xlu1 %1516 }
 0x349   : > { %2020 = vst [vmem:[%s3731_s25 + $0x6] sm:$0xfc] %v1471_v1 }
 0x34b   : > { %v1515_v53 = vpop.permute.xlu0 %1514 }
 0x34c   : > { %v1522_v45 = vsel %vm212_vm1, %v1515_v53, %v1517_v58  ;;  %v1878_v11 = vpop.permute.xlu1 %1877 }
 0x34d   : > { %2022 = vst [vmem:[%s3731_s25 + $0xe] sm:$0xfc] %v1522_v45 }
 0x34f   : > { %v1876_v17 = vpop.permute.xlu0 %1875 }
 0x350   : > { %v1880_v62 = vsel %vm212_vm1, %v1876_v17, %v1878_v11 }
 0x351   : > { %2025 = vst [vmem:[%s3731_s25 + $0x1e] sm:$0x3] %v1880_v62 }
 0x352   : > { %2135 = shalt.err (!%p2132_p6)
}
 0x353   : > { %s2136_s15 = scalar_lea.hbm %s3754_s2, 512  ;;  %s2140_s22 = scalar_lea.hbm %s3813_s1, 2048 }
 0x354   : > { %p2137_p7 = scmp.ne.s32.totalorder %s3754_s2, %s2136_s15  ;;  %p2141_p11 = scmp.lt.u32.totalorder %s3754_s2, %s3813_s1 }
 0x355   : > { %p2142_p12 = scmp.lt.u32.totalorder %s2140_s22, %s2136_s15  ;;  %p2144_p0 = scmp.lt.u32.totalorder %s2136_s15, %s3754_s2 }
 0x356   : > { %p2138_p9 = pnand %p2137_p7, %p2288_p3 }
 0x357   : > { %p2143_p13 = por %p2142_p12, %p2141_p11 }
 0x358   : > { %p2139_p10 = pneg %p2138_p9 }
 0x359   : > { %p2145_p1 = por %p2144_p0, %p2143_p13 }
 0x35b   : > { %p2146_p2 = pnand %p2145_p1, %p2139_p10 }
 0x35d   : > { %2149 = shalt.err (!%p2146_p2)
}
 0x35e   : > { %s2224_s26 = smov 128   ;;  %s2225_s27 = smov 256  }
 0x35f   : > { %s2226_s29 = smov 8  }
 0x360   : > { %2035 = dma.vmem_to_hbm [thread:$0]  (%p2288_p3), %s3748_s28, 512, %s3754_s2, %s3760_s9, %s2224_s26, %s2225_s27, %s2226_s29  }
 0x361 PF: > { %p2041_p4 = scmp.ge.s32.totalorder %s2216_s13, 2  ;;  %s1916_s10 = sand.u32 1, %s2188_s6  }
 0x362   : > { %s1917_s30 = scalar_lea.sflag [#allocation3], %s1916_s10 }
 0x363   : > { %p2038_p5 = pnand %p2041_p4, %p2297_p8 }
 0x365   : > { %2183 = dma.done.wait (!%p2038_p5), %s1917_s30, 512  }
 0x366   : > { %2185 = vsyncadd (!%p2038_p5), %s1917_s30, 4294966784  ;;  %s14_s13 = sadd.s32 1, %s2216_s13   ;;  %s4001_s6 = smov %s2192_s7 }
 0x367   : > { %p11_p6 = scmp.ge.s32.totalorder %s14_s13, 6   ;;  %s4002_s7 = smov %s2196_s8 }
 0x368   : > { %s4003_s8 = smov %s2306_s24  ;;  %s4004_s9 = smov %s2208_s11 }
 0x369   : > { %s4005_s10 = smov %s2212_s12  ;;  %s4006_s11 = smov %s4009_s16 }
 0x36a   : > { %s4007_s12 = smov %s4013_s17  ;;  %13 = sbr.rel (!%p11_p6) target bundleno = 5 (0x5), region = 65 }
 0x371   :  { %1922 = vsyncpa [#allocation3], 1 }
 0x372   :  { %1924 = vsyncpa [#allocation3 + $0x1], 1 }

</bundles_post_ra>
